<compile_context>
chip_gen: v7x
topology: tpu7x:2x2x1
jax: 0.10.0
libtpu: 0.0.40
codegen_flags: <defaults>
</compile_context>

<pallas_src>
import functools

import jax
import jax.numpy as jnp
from jax.experimental import pallas as pl
from jax.experimental.pallas import tpu as pltpu


# ----------------------------------------------------------------------------
# Fused Pallas kernel
# ----------------------------------------------------------------------------
def _fused_lstm_transfer_kernel(
        S, B, H,
        x_ref, len_ref,
        wih1_ref, whh1_ref, b1_ref,
        wih2_ref, whh2_ref, b2_ref,
        wfc_ref, bfc_ref,
        rep_ref, logits_ref):
    """2-layer LSTM + last-valid-step gather + FC head in one invocation.

    x_ref      : (S*B, I) time-major input; rows t*B .. t*B+B-1 are timestep t
    len_ref    : (B, 1)   int32 valid lengths (>= 1)
    w*_ref     : pre-transposed weights, gate order i, f, g, o
    rep_ref    : (B, H)   output[length-1, b, :]
    logits_ref : (B, 2)   fc(representation)
    """
    # Hoisted layer-1 input projection: one big MXU dot + one bias broadcast.
    gx = (jnp.dot(x_ref[...], wih1_ref[...],
                  preferred_element_type=jnp.float32) + b1_ref[...])  # (S*B,4H)

    lengths = len_ref[...]                     # (B, 1) int32
    wh1 = whh1_ref[...]                        # (H, 4H)
    wi2 = wih2_ref[...]                        # (H, 4H)
    wh2 = whh2_ref[...]                        # (H, 4H)
    b2 = b2_ref[...]                           # (1, 4H)

    def cell(gates, c_prev):
        i = jax.nn.sigmoid(gates[:, 0 * H:1 * H])
        f = jax.nn.sigmoid(gates[:, 1 * H:2 * H])
        g = jnp.tanh(gates[:, 2 * H:3 * H])
        o = jax.nn.sigmoid(gates[:, 3 * H:4 * H])
        c_new = f * c_prev + i * g
        h_new = o * jnp.tanh(c_new)
        return h_new, c_new

    zeros = jnp.zeros((B, H), jnp.float32)
    h1, c1, h2, c2, rep = zeros, zeros, zeros, zeros, zeros

    # Static (fully unrolled) time recurrence: only h @ W_hh is serial.
    for t in range(S):
        # --- layer 1 ---
        g1 = gx[t * B:(t + 1) * B, :] + jnp.dot(
            h1, wh1, preferred_element_type=jnp.float32)
        h1, c1 = cell(g1, c1)

        # --- layer 2 (fed directly from layer-1 h_t, never written to HBM) ---
        g2 = (jnp.dot(h1, wi2, preferred_element_type=jnp.float32)
              + jnp.dot(h2, wh2, preferred_element_type=jnp.float32)
              + b2)
        h2, c2 = cell(g2, c2)

        # representation = output[length - 1, b, :]  (in-register select)
        rep = jnp.where(lengths == (t + 1), h2, rep)

    rep_ref[...] = rep.astype(rep_ref.dtype)
    logits_ref[...] = (jnp.dot(rep, wfc_ref[...],
                               preferred_element_type=jnp.float32)
                       + bfc_ref[...]).astype(logits_ref.dtype)


# ----------------------------------------------------------------------------
# Wrapper
# ----------------------------------------------------------------------------
@jax.jit
def lstm_transfer_forward(x, x_length, params):
    """Full LSTMTransfer.forward (2-layer LSTM, matching layer_num=2).

    x:        (seq_len, batch, input_size) float32, time-major
    x_length: (batch,) int32 valid lengths (>= 1)
    returns:  (representation (batch, hidden), logits (batch, 2))
    """
    S, B, I = x.shape
    l1, l2 = params["lstm"]
    H = l1["w_hh_t"].shape[0]

    x2d = x.reshape(S * B, I)                         # free metadata reshape
    len2d = x_length.astype(jnp.int32).reshape(B, 1)

    vmem = pl.BlockSpec(memory_space=pltpu.MemorySpace.VMEM)
    rep, logits = pl.pallas_call(
        functools.partial(_fused_lstm_transfer_kernel, S, B, H),
        out_shape=(jax.ShapeDtypeStruct((B, H), jnp.float32),
                   jax.ShapeDtypeStruct((B, 2), jnp.float32)),
        in_specs=[vmem] * 10,
        out_specs=(vmem, vmem),
    )(x2d, len2d,
      l1["w_ih_t"], l1["w_hh_t"], l1["b"],
      l2["w_ih_t"], l2["w_hh_t"], l2["b"],
      params["fc_w_t"], params["fc_b"])

    # Dropout(0.8): eval-mode identity (see TODO at top of file).
    return rep, logits


# ----------------------------------------------------------------------------
# Pure-JAX reference (for a correctness check in main)
# ----------------------------------------------------------------------------
def _reference_forward(x, x_length, params):
    S, B, _ = x.shape
    h = x
    for layer in params["lstm"]:
        wih, whh, b = layer["w_ih_t"], layer["w_hh_t"], layer["b"]
        H = whh.shape[0]

        def step(carry, x_t, wih=wih, whh=whh, b=b, H=H):
            h_prev, c_prev = carry
            g = x_t @ wih + h_prev @ whh + b
            i = jax.nn.sigmoid(g[:, 0 * H:1 * H])
            f = jax.nn.sigmoid(g[:, 1 * H:2 * H])
            gg = jnp.tanh(g[:, 2 * H:3 * H])
            o = jax.nn.sigmoid(g[:, 3 * H:4 * H])
            c = f * c_prev + i * gg
            hh = o * jnp.tanh(c)
            return (hh, c), hh

        z = jnp.zeros((B, H), jnp.float32)
        _, h = jax.lax.scan(step, (z, z), h)
    rep = h[x_length - 1, jnp.arange(B), :]
    logits = rep @ params["fc_w_t"] + params["fc_b"]
    return rep, logits


# ----------------------------------------------------------------------------
# Deterministic parameter init (PyTorch-style uniform(-1/sqrt(H), 1/sqrt(H)))
# ----------------------------------------------------------------------------
def init_params(key, input_size, hidden_size, layer_num):
    bound = 1.0 / jnp.sqrt(jnp.float32(hidden_size))
    params = {"lstm": []}
    for l in range(layer_num):
        in_dim = input_size if l == 0 else hidden_size
        key, k1, k2, k3, k4 = jax.random.split(key, 5)
        w_ih = jax.random.uniform(k1, (4 * hidden_size, in_dim),
                                  minval=-bound, maxval=bound, dtype=jnp.float32)
        w_hh = jax.random.uniform(k2, (4 * hidden_size, hidden_size),
                                  minval=-bound, maxval=bound, dtype=jnp.float32)
        b_ih = jax.random.uniform(k3, (4 * hidden_size,),
                                  minval=-bound, maxval=bound, dtype=jnp.float32)
        b_hh = jax.random.uniform(k4, (4 * hidden_size,),
                                  minval=-bound, maxval=bound, dtype=jnp.float32)
        params["lstm"].append({
            "w_ih_t": w_ih.T,                          # (in_dim, 4H)
            "w_hh_t": w_hh.T,                          # (H, 4H)
            "b": (b_ih + b_hh)[None, :],               # (1, 4H)
        })
    key, k5, k6 = jax.random.split(key, 3)
    w_fc = jax.random.uniform(k5, (2, hidden_size),
                              minval=-bound, maxval=bound, dtype=jnp.float32)
    b_fc = jax.random.uniform(k6, (2,),
                              minval=-bound, maxval=bound, dtype=jnp.float32)
    params["fc_w_t"] = w_fc.T                          # (H, 2)
    params["fc_b"] = b_fc[None, :]                     # (1, 2)
    # src_weight / tgt_weight exist in __init__ but are unused in forward().
    key, k7, k8 = jax.random.split(key, 3)
    params["src_weight"] = jax.random.normal(k7, (hidden_size, 128), jnp.float32)
    params["tgt_weight"] = jax.random.normal(k8, (hidden_size, 128), jnp.float32)
    return params


# ----------------------------------------------------------------------------
# Main
# ----------------------------------------------------------------------------
if __name__ == "__main__":
    seq_len, batch, input_size, hidden_size, layer_num = 10, 8, 16, 32, 2

    key = jax.random.PRNGKey(0)
    key, kx = jax.random.split(key)
    x = jax.random.normal(kx, (seq_len, batch, input_size), dtype=jnp.float32)
    x_length = jnp.array([10, 7, 5, 10, 3, 8, 6, 9], dtype=jnp.int32)  # all >= 1

    params = init_params(key, input_size, hidden_size, layer_num)

    rep, logits = lstm_transfer_forward(x, x_length, params)
    jax.block_until_ready((rep, logits))

    assert rep.shape == (batch, hidden_size)
    assert logits.shape == (batch, 2)
    assert bool(jnp.all(jnp.isfinite(rep))) and bool(jnp.all(jnp.isfinite(logits)))

    # Correctness vs pure-JAX reference.
    rep_ref, logits_ref = _reference_forward(x, x_length, params)
    assert bool(jnp.allclose(rep, rep_ref, atol=2e-3, rtol=2e-3))
    assert bool(jnp.allclose(logits, logits_ref, atol=2e-3, rtol=2e-3))

    print("KERNEL_OK")
</pallas_src>

<mosaic_0001>
module attributes {stable_mosaic.version = 11 : i64} {
  func.func @_fused_lstm_transfer_kernel(%arg0: memref<80x16xf32, #tpu.memory_space<vmem>>, %arg1: memref<8x1xi32, #tpu.memory_space<vmem>>, %arg2: memref<16x128xf32, #tpu.memory_space<vmem>>, %arg3: memref<32x128xf32, #tpu.memory_space<vmem>>, %arg4: memref<1x128xf32, #tpu.memory_space<vmem>>, %arg5: memref<32x128xf32, #tpu.memory_space<vmem>>, %arg6: memref<32x128xf32, #tpu.memory_space<vmem>>, %arg7: memref<1x128xf32, #tpu.memory_space<vmem>>, %arg8: memref<32x2xf32, #tpu.memory_space<vmem>>, %arg9: memref<1x2xf32, #tpu.memory_space<vmem>>, %arg10: memref<8x32xf32, #tpu.memory_space<vmem>>, %arg11: memref<8x2xf32, #tpu.memory_space<vmem>>) attributes {dimension_semantics = [], scalar_prefetch = 0 : i64, scratch_operands = 0 : i64, tpu.core_type = #tpu.core_type<tc>} {
    %c0 = arith.constant 0 : index
    %c0_0 = arith.constant 0 : index
    %0 = vector.load %arg0[%c0, %c0_0] : memref<80x16xf32, #tpu.memory_space<vmem>>, vector<80x16xf32>
    %c0_1 = arith.constant 0 : index
    %c0_2 = arith.constant 0 : index
    %1 = vector.load %arg2[%c0_1, %c0_2] : memref<16x128xf32, #tpu.memory_space<vmem>>, vector<16x128xf32>
    %cst = arith.constant dense<0.000000e+00> : vector<80x128xf32>
    %2 = tpu.matmul %0, %1, %cst {dimension_numbers = #tpu.dot_dimension_numbers<[1], [0], [0], [1], [0, 0, 1, 1], [], []>} : vector<80x16xf32>, vector<16x128xf32>, vector<80x128xf32> -> vector<80x128xf32>
    %c0_3 = arith.constant 0 : index
    %c0_4 = arith.constant 0 : index
    %3 = vector.load %arg4[%c0_3, %c0_4] : memref<1x128xf32, #tpu.memory_space<vmem>>, vector<1x128xf32>
    %4 = vector.broadcast %3 : vector<1x128xf32> to vector<80x128xf32>
    %5 = arith.addf %2, %4 : vector<80x128xf32>
    %c0_5 = arith.constant 0 : index
    %c0_6 = arith.constant 0 : index
    %6 = vector.load %arg1[%c0_5, %c0_6] : memref<8x1xi32, #tpu.memory_space<vmem>>, vector<8x1xi32>
    %c0_7 = arith.constant 0 : index
    %c0_8 = arith.constant 0 : index
    %7 = vector.load %arg3[%c0_7, %c0_8] : memref<32x128xf32, #tpu.memory_space<vmem>>, vector<32x128xf32>
    %c0_9 = arith.constant 0 : index
    %c0_10 = arith.constant 0 : index
    %8 = vector.load %arg5[%c0_9, %c0_10] : memref<32x128xf32, #tpu.memory_space<vmem>>, vector<32x128xf32>
    %c0_11 = arith.constant 0 : index
    %c0_12 = arith.constant 0 : index
    %9 = vector.load %arg6[%c0_11, %c0_12] : memref<32x128xf32, #tpu.memory_space<vmem>>, vector<32x128xf32>
    %c0_13 = arith.constant 0 : index
    %c0_14 = arith.constant 0 : index
    %10 = vector.load %arg7[%c0_13, %c0_14] : memref<1x128xf32, #tpu.memory_space<vmem>>, vector<1x128xf32>
    %cst_15 = arith.constant 0.000000e+00 : f32
    %11 = vector.broadcast %cst_15 : f32 to vector<8x32xf32>
    %12 = vector.extract_strided_slice %5 {offsets = [0, 0], sizes = [8, 128], strides = [1, 1]} : vector<80x128xf32> to vector<8x128xf32>
    %cst_16 = arith.constant dense<0.000000e+00> : vector<8x128xf32>
    %13 = tpu.matmul %11, %7, %cst_16 {dimension_numbers = #tpu.dot_dimension_numbers<[1], [0], [0], [1], [0, 0, 1, 1], [], []>} : vector<8x32xf32>, vector<32x128xf32>, vector<8x128xf32> -> vector<8x128xf32>
    %14 = arith.addf %12, %13 : vector<8x128xf32>
    %15 = vector.extract_strided_slice %14 {offsets = [0, 0], sizes = [8, 32], strides = [1, 1]} : vector<8x128xf32> to vector<8x32xf32>
    %16 = arith.negf %15 : vector<8x32xf32>
    %17 = math.exp %16 : vector<8x32xf32>
    %cst_17 = arith.constant 1.000000e+00 : f32
    %18 = vector.broadcast %cst_17 : f32 to vector<8x32xf32>
    %19 = arith.addf %18, %17 : vector<8x32xf32>
    %20 = arith.divf %18, %19 : vector<8x32xf32>
    %21 = vector.extract_strided_slice %14 {offsets = [0, 32], sizes = [8, 32], strides = [1, 1]} : vector<8x128xf32> to vector<8x32xf32>
    %22 = arith.negf %21 : vector<8x32xf32>
    %23 = math.exp %22 : vector<8x32xf32>
    %cst_18 = arith.constant 1.000000e+00 : f32
    %24 = vector.broadcast %cst_18 : f32 to vector<8x32xf32>
    %25 = arith.addf %24, %23 : vector<8x32xf32>
    %26 = arith.divf %24, %25 : vector<8x32xf32>
    %27 = vector.extract_strided_slice %14 {offsets = [0, 64], sizes = [8, 32], strides = [1, 1]} : vector<8x128xf32> to vector<8x32xf32>
    %28 = math.tanh %27 : vector<8x32xf32>
    %29 = vector.extract_strided_slice %14 {offsets = [0, 96], sizes = [8, 32], strides = [1, 1]} : vector<8x128xf32> to vector<8x32xf32>
    %30 = arith.negf %29 : vector<8x32xf32>
    %31 = math.exp %30 : vector<8x32xf32>
    %cst_19 = arith.constant 1.000000e+00 : f32
    %32 = vector.broadcast %cst_19 : f32 to vector<8x32xf32>
    %33 = arith.addf %32, %31 : vector<8x32xf32>
    %34 = arith.divf %32, %33 : vector<8x32xf32>
    %35 = arith.mulf %26, %11 : vector<8x32xf32>
    %36 = arith.mulf %20, %28 : vector<8x32xf32>
    %37 = arith.addf %35, %36 : vector<8x32xf32>
    %38 = math.tanh %37 : vector<8x32xf32>
    %39 = arith.mulf %34, %38 : vector<8x32xf32>
    %cst_20 = arith.constant dense<0.000000e+00> : vector<8x128xf32>
    %40 = tpu.matmul %39, %8, %cst_20 {dimension_numbers = #tpu.dot_dimension_numbers<[1], [0], [0], [1], [0, 0, 1, 1], [], []>} : vector<8x32xf32>, vector<32x128xf32>, vector<8x128xf32> -> vector<8x128xf32>
    %cst_21 = arith.constant dense<0.000000e+00> : vector<8x128xf32>
    %41 = tpu.matmul %11, %9, %cst_21 {dimension_numbers = #tpu.dot_dimension_numbers<[1], [0], [0], [1], [0, 0, 1, 1], [], []>} : vector<8x32xf32>, vector<32x128xf32>, vector<8x128xf32> -> vector<8x128xf32>
    %42 = arith.addf %40, %41 : vector<8x128xf32>
    %43 = vector.broadcast %10 : vector<1x128xf32> to vector<8x128xf32>
    %44 = arith.addf %42, %43 : vector<8x128xf32>
    %45 = vector.extract_strided_slice %44 {offsets = [0, 0], sizes = [8, 32], strides = [1, 1]} : vector<8x128xf32> to vector<8x32xf32>
    %46 = arith.negf %45 : vector<8x32xf32>
    %47 = math.exp %46 : vector<8x32xf32>
    %cst_22 = arith.constant 1.000000e+00 : f32
    %48 = vector.broadcast %cst_22 : f32 to vector<8x32xf32>
    %49 = arith.addf %48, %47 : vector<8x32xf32>
    %50 = arith.divf %48, %49 : vector<8x32xf32>
    %51 = vector.extract_strided_slice %44 {offsets = [0, 32], sizes = [8, 32], strides = [1, 1]} : vector<8x128xf32> to vector<8x32xf32>
    %52 = arith.negf %51 : vector<8x32xf32>
    %53 = math.exp %52 : vector<8x32xf32>
    %cst_23 = arith.constant 1.000000e+00 : f32
    %54 = vector.broadcast %cst_23 : f32 to vector<8x32xf32>
    %55 = arith.addf %54, %53 : vector<8x32xf32>
    %56 = arith.divf %54, %55 : vector<8x32xf32>
    %57 = vector.extract_strided_slice %44 {offsets = [0, 64], sizes = [8, 32], strides = [1, 1]} : vector<8x128xf32> to vector<8x32xf32>
    %58 = math.tanh %57 : vector<8x32xf32>
    %59 = vector.extract_strided_slice %44 {offsets = [0, 96], sizes = [8, 32], strides = [1, 1]} : vector<8x128xf32> to vector<8x32xf32>
    %60 = arith.negf %59 : vector<8x32xf32>
    %61 = math.exp %60 : vector<8x32xf32>
    %cst_24 = arith.constant 1.000000e+00 : f32
    %62 = vector.broadcast %cst_24 : f32 to vector<8x32xf32>
    %63 = arith.addf %62, %61 : vector<8x32xf32>
    %64 = arith.divf %62, %63 : vector<8x32xf32>
    %65 = arith.mulf %56, %11 : vector<8x32xf32>
    %66 = arith.mulf %50, %58 : vector<8x32xf32>
    %67 = arith.addf %65, %66 : vector<8x32xf32>
    %68 = math.tanh %67 : vector<8x32xf32>
    %69 = arith.mulf %64, %68 : vector<8x32xf32>
    %c1_i32 = arith.constant 1 : i32
    %70 = vector.broadcast %c1_i32 : i32 to vector<8x1xi32>
    %71 = arith.cmpi eq, %6, %70 : vector<8x1xi32>
    %72 = vector.shape_cast %71 : vector<8x1xi1> to vector<8x1xi1>
    %73 = vector.broadcast %72 : vector<8x1xi1> to vector<8x32xi1>
    %74 = arith.select %73, %69, %11 : vector<8x32xi1>, vector<8x32xf32>
    %75 = vector.extract_strided_slice %5 {offsets = [8, 0], sizes = [8, 128], strides = [1, 1]} : vector<80x128xf32> to vector<8x128xf32>
    %cst_25 = arith.constant dense<0.000000e+00> : vector<8x128xf32>
    %76 = tpu.matmul %39, %7, %cst_25 {dimension_numbers = #tpu.dot_dimension_numbers<[1], [0], [0], [1], [0, 0, 1, 1], [], []>} : vector<8x32xf32>, vector<32x128xf32>, vector<8x128xf32> -> vector<8x128xf32>
    %77 = arith.addf %75, %76 : vector<8x128xf32>
    %78 = vector.extract_strided_slice %77 {offsets = [0, 0], sizes = [8, 32], strides = [1, 1]} : vector<8x128xf32> to vector<8x32xf32>
    %79 = arith.negf %78 : vector<8x32xf32>
    %80 = math.exp %79 : vector<8x32xf32>
    %cst_26 = arith.constant 1.000000e+00 : f32
    %81 = vector.broadcast %cst_26 : f32 to vector<8x32xf32>
    %82 = arith.addf %81, %80 : vector<8x32xf32>
    %83 = arith.divf %81, %82 : vector<8x32xf32>
    %84 = vector.extract_strided_slice %77 {offsets = [0, 32], sizes = [8, 32], strides = [1, 1]} : vector<8x128xf32> to vector<8x32xf32>
    %85 = arith.negf %84 : vector<8x32xf32>
    %86 = math.exp %85 : vector<8x32xf32>
    %cst_27 = arith.constant 1.000000e+00 : f32
    %87 = vector.broadcast %cst_27 : f32 to vector<8x32xf32>
    %88 = arith.addf %87, %86 : vector<8x32xf32>
    %89 = arith.divf %87, %88 : vector<8x32xf32>
    %90 = vector.extract_strided_slice %77 {offsets = [0, 64], sizes = [8, 32], strides = [1, 1]} : vector<8x128xf32> to vector<8x32xf32>
    %91 = math.tanh %90 : vector<8x32xf32>
    %92 = vector.extract_strided_slice %77 {offsets = [0, 96], sizes = [8, 32], strides = [1, 1]} : vector<8x128xf32> to vector<8x32xf32>
    %93 = arith.negf %92 : vector<8x32xf32>
    %94 = math.exp %93 : vector<8x32xf32>
    %cst_28 = arith.constant 1.000000e+00 : f32
    %95 = vector.broadcast %cst_28 : f32 to vector<8x32xf32>
    %96 = arith.addf %95, %94 : vector<8x32xf32>
    %97 = arith.divf %95, %96 : vector<8x32xf32>
    %98 = arith.mulf %89, %37 : vector<8x32xf32>
    %99 = arith.mulf %83, %91 : vector<8x32xf32>
    %100 = arith.addf %98, %99 : vector<8x32xf32>
    %101 = math.tanh %100 : vector<8x32xf32>
    %102 = arith.mulf %97, %101 : vector<8x32xf32>
    %cst_29 = arith.constant dense<0.000000e+00> : vector<8x128xf32>
    %103 = tpu.matmul %102, %8, %cst_29 {dimension_numbers = #tpu.dot_dimension_numbers<[1], [0], [0], [1], [0, 0, 1, 1], [], []>} : vector<8x32xf32>, vector<32x128xf32>, vector<8x128xf32> -> vector<8x128xf32>
    %cst_30 = arith.constant dense<0.000000e+00> : vector<8x128xf32>
    %104 = tpu.matmul %69, %9, %cst_30 {dimension_numbers = #tpu.dot_dimension_numbers<[1], [0], [0], [1], [0, 0, 1, 1], [], []>} : vector<8x32xf32>, vector<32x128xf32>, vector<8x128xf32> -> vector<8x128xf32>
    %105 = arith.addf %103, %104 : vector<8x128xf32>
    %106 = vector.broadcast %10 : vector<1x128xf32> to vector<8x128xf32>
    %107 = arith.addf %105, %106 : vector<8x128xf32>
    %108 = vector.extract_strided_slice %107 {offsets = [0, 0], sizes = [8, 32], strides = [1, 1]} : vector<8x128xf32> to vector<8x32xf32>
    %109 = arith.negf %108 : vector<8x32xf32>
    %110 = math.exp %109 : vector<8x32xf32>
    %cst_31 = arith.constant 1.000000e+00 : f32
    %111 = vector.broadcast %cst_31 : f32 to vector<8x32xf32>
    %112 = arith.addf %111, %110 : vector<8x32xf32>
    %113 = arith.divf %111, %112 : vector<8x32xf32>
    %114 = vector.extract_strided_slice %107 {offsets = [0, 32], sizes = [8, 32], strides = [1, 1]} : vector<8x128xf32> to vector<8x32xf32>
    %115 = arith.negf %114 : vector<8x32xf32>
    %116 = math.exp %115 : vector<8x32xf32>
    %cst_32 = arith.constant 1.000000e+00 : f32
    %117 = vector.broadcast %cst_32 : f32 to vector<8x32xf32>
    %118 = arith.addf %117, %116 : vector<8x32xf32>
    %119 = arith.divf %117, %118 : vector<8x32xf32>
    %120 = vector.extract_strided_slice %107 {offsets = [0, 64], sizes = [8, 32], strides = [1, 1]} : vector<8x128xf32> to vector<8x32xf32>
    %121 = math.tanh %120 : vector<8x32xf32>
    %122 = vector.extract_strided_slice %107 {offsets = [0, 96], sizes = [8, 32], strides = [1, 1]} : vector<8x128xf32> to vector<8x32xf32>
    %123 = arith.negf %122 : vector<8x32xf32>
    %124 = math.exp %123 : vector<8x32xf32>
    %cst_33 = arith.constant 1.000000e+00 : f32
    %125 = vector.broadcast %cst_33 : f32 to vector<8x32xf32>
    %126 = arith.addf %125, %124 : vector<8x32xf32>
    %127 = arith.divf %125, %126 : vector<8x32xf32>
    %128 = arith.mulf %119, %67 : vector<8x32xf32>
    %129 = arith.mulf %113, %121 : vector<8x32xf32>
    %130 = arith.addf %128, %129 : vector<8x32xf32>
    %131 = math.tanh %130 : vector<8x32xf32>
    %132 = arith.mulf %127, %131 : vector<8x32xf32>
    %c2_i32 = arith.constant 2 : i32
    %133 = vector.broadcast %c2_i32 : i32 to vector<8x1xi32>
    %134 = arith.cmpi eq, %6, %133 : vector<8x1xi32>
    %135 = vector.shape_cast %134 : vector<8x1xi1> to vector<8x1xi1>
    %136 = vector.broadcast %135 : vector<8x1xi1> to vector<8x32xi1>
    %137 = arith.select %136, %132, %74 : vector<8x32xi1>, vector<8x32xf32>
    %138 = vector.extract_strided_slice %5 {offsets = [16, 0], sizes = [8, 128], strides = [1, 1]} : vector<80x128xf32> to vector<8x128xf32>
    %cst_34 = arith.constant dense<0.000000e+00> : vector<8x128xf32>
    %139 = tpu.matmul %102, %7, %cst_34 {dimension_numbers = #tpu.dot_dimension_numbers<[1], [0], [0], [1], [0, 0, 1, 1], [], []>} : vector<8x32xf32>, vector<32x128xf32>, vector<8x128xf32> -> vector<8x128xf32>
    %140 = arith.addf %138, %139 : vector<8x128xf32>
    %141 = vector.extract_strided_slice %140 {offsets = [0, 0], sizes = [8, 32], strides = [1, 1]} : vector<8x128xf32> to vector<8x32xf32>
    %142 = arith.negf %141 : vector<8x32xf32>
    %143 = math.exp %142 : vector<8x32xf32>
    %cst_35 = arith.constant 1.000000e+00 : f32
    %144 = vector.broadcast %cst_35 : f32 to vector<8x32xf32>
    %145 = arith.addf %144, %143 : vector<8x32xf32>
    %146 = arith.divf %144, %145 : vector<8x32xf32>
    %147 = vector.extract_strided_slice %140 {offsets = [0, 32], sizes = [8, 32], strides = [1, 1]} : vector<8x128xf32> to vector<8x32xf32>
    %148 = arith.negf %147 : vector<8x32xf32>
    %149 = math.exp %148 : vector<8x32xf32>
    %cst_36 = arith.constant 1.000000e+00 : f32
    %150 = vector.broadcast %cst_36 : f32 to vector<8x32xf32>
    %151 = arith.addf %150, %149 : vector<8x32xf32>
    %152 = arith.divf %150, %151 : vector<8x32xf32>
    %153 = vector.extract_strided_slice %140 {offsets = [0, 64], sizes = [8, 32], strides = [1, 1]} : vector<8x128xf32> to vector<8x32xf32>
    %154 = math.tanh %153 : vector<8x32xf32>
    %155 = vector.extract_strided_slice %140 {offsets = [0, 96], sizes = [8, 32], strides = [1, 1]} : vector<8x128xf32> to vector<8x32xf32>
    %156 = arith.negf %155 : vector<8x32xf32>
    %157 = math.exp %156 : vector<8x32xf32>
    %cst_37 = arith.constant 1.000000e+00 : f32
    %158 = vector.broadcast %cst_37 : f32 to vector<8x32xf32>
    %159 = arith.addf %158, %157 : vector<8x32xf32>
    %160 = arith.divf %158, %159 : vector<8x32xf32>
    %161 = arith.mulf %152, %100 : vector<8x32xf32>
    %162 = arith.mulf %146, %154 : vector<8x32xf32>
    %163 = arith.addf %161, %162 : vector<8x32xf32>
    %164 = math.tanh %163 : vector<8x32xf32>
    %165 = arith.mulf %160, %164 : vector<8x32xf32>
    %cst_38 = arith.constant dense<0.000000e+00> : vector<8x128xf32>
    %166 = tpu.matmul %165, %8, %cst_38 {dimension_numbers = #tpu.dot_dimension_numbers<[1], [0], [0], [1], [0, 0, 1, 1], [], []>} : vector<8x32xf32>, vector<32x128xf32>, vector<8x128xf32> -> vector<8x128xf32>
    %cst_39 = arith.constant dense<0.000000e+00> : vector<8x128xf32>
    %167 = tpu.matmul %132, %9, %cst_39 {dimension_numbers = #tpu.dot_dimension_numbers<[1], [0], [0], [1], [0, 0, 1, 1], [], []>} : vector<8x32xf32>, vector<32x128xf32>, vector<8x128xf32> -> vector<8x128xf32>
    %168 = arith.addf %166, %167 : vector<8x128xf32>
    %169 = vector.broadcast %10 : vector<1x128xf32> to vector<8x128xf32>
    %170 = arith.addf %168, %169 : vector<8x128xf32>
    %171 = vector.extract_strided_slice %170 {offsets = [0, 0], sizes = [8, 32], strides = [1, 1]} : vector<8x128xf32> to vector<8x32xf32>
    %172 = arith.negf %171 : vector<8x32xf32>
    %173 = math.exp %172 : vector<8x32xf32>
    %cst_40 = arith.constant 1.000000e+00 : f32
    %174 = vector.broadcast %cst_40 : f32 to vector<8x32xf32>
    %175 = arith.addf %174, %173 : vector<8x32xf32>
    %176 = arith.divf %174, %175 : vector<8x32xf32>
    %177 = vector.extract_strided_slice %170 {offsets = [0, 32], sizes = [8, 32], strides = [1, 1]} : vector<8x128xf32> to vector<8x32xf32>
    %178 = arith.negf %177 : vector<8x32xf32>
    %179 = math.exp %178 : vector<8x32xf32>
    %cst_41 = arith.constant 1.000000e+00 : f32
    %180 = vector.broadcast %cst_41 : f32 to vector<8x32xf32>
    %181 = arith.addf %180, %179 : vector<8x32xf32>
    %182 = arith.divf %180, %181 : vector<8x32xf32>
    %183 = vector.extract_strided_slice %170 {offsets = [0, 64], sizes = [8, 32], strides = [1, 1]} : vector<8x128xf32> to vector<8x32xf32>
    %184 = math.tanh %183 : vector<8x32xf32>
    %185 = vector.extract_strided_slice %170 {offsets = [0, 96], sizes = [8, 32], strides = [1, 1]} : vector<8x128xf32> to vector<8x32xf32>
    %186 = arith.negf %185 : vector<8x32xf32>
    %187 = math.exp %186 : vector<8x32xf32>
    %cst_42 = arith.constant 1.000000e+00 : f32
    %188 = vector.broadcast %cst_42 : f32 to vector<8x32xf32>
    %189 = arith.addf %188, %187 : vector<8x32xf32>
    %190 = arith.divf %188, %189 : vector<8x32xf32>
    %191 = arith.mulf %182, %130 : vector<8x32xf32>
    %192 = arith.mulf %176, %184 : vector<8x32xf32>
    %193 = arith.addf %191, %192 : vector<8x32xf32>
    %194 = math.tanh %193 : vector<8x32xf32>
    %195 = arith.mulf %190, %194 : vector<8x32xf32>
    %c3_i32 = arith.constant 3 : i32
    %196 = vector.broadcast %c3_i32 : i32 to vector<8x1xi32>
    %197 = arith.cmpi eq, %6, %196 : vector<8x1xi32>
    %198 = vector.shape_cast %197 : vector<8x1xi1> to vector<8x1xi1>
    %199 = vector.broadcast %198 : vector<8x1xi1> to vector<8x32xi1>
    %200 = arith.select %199, %195, %137 : vector<8x32xi1>, vector<8x32xf32>
    %201 = vector.extract_strided_slice %5 {offsets = [24, 0], sizes = [8, 128], strides = [1, 1]} : vector<80x128xf32> to vector<8x128xf32>
    %cst_43 = arith.constant dense<0.000000e+00> : vector<8x128xf32>
    %202 = tpu.matmul %165, %7, %cst_43 {dimension_numbers = #tpu.dot_dimension_numbers<[1], [0], [0], [1], [0, 0, 1, 1], [], []>} : vector<8x32xf32>, vector<32x128xf32>, vector<8x128xf32> -> vector<8x128xf32>
    %203 = arith.addf %201, %202 : vector<8x128xf32>
    %204 = vector.extract_strided_slice %203 {offsets = [0, 0], sizes = [8, 32], strides = [1, 1]} : vector<8x128xf32> to vector<8x32xf32>
    %205 = arith.negf %204 : vector<8x32xf32>
    %206 = math.exp %205 : vector<8x32xf32>
    %cst_44 = arith.constant 1.000000e+00 : f32
    %207 = vector.broadcast %cst_44 : f32 to vector<8x32xf32>
    %208 = arith.addf %207, %206 : vector<8x32xf32>
    %209 = arith.divf %207, %208 : vector<8x32xf32>
    %210 = vector.extract_strided_slice %203 {offsets = [0, 32], sizes = [8, 32], strides = [1, 1]} : vector<8x128xf32> to vector<8x32xf32>
    %211 = arith.negf %210 : vector<8x32xf32>
    %212 = math.exp %211 : vector<8x32xf32>
    %cst_45 = arith.constant 1.000000e+00 : f32
    %213 = vector.broadcast %cst_45 : f32 to vector<8x32xf32>
    %214 = arith.addf %213, %212 : vector<8x32xf32>
    %215 = arith.divf %213, %214 : vector<8x32xf32>
    %216 = vector.extract_strided_slice %203 {offsets = [0, 64], sizes = [8, 32], strides = [1, 1]} : vector<8x128xf32> to vector<8x32xf32>
    %217 = math.tanh %216 : vector<8x32xf32>
    %218 = vector.extract_strided_slice %203 {offsets = [0, 96], sizes = [8, 32], strides = [1, 1]} : vector<8x128xf32> to vector<8x32xf32>
    %219 = arith.negf %218 : vector<8x32xf32>
    %220 = math.exp %219 : vector<8x32xf32>
    %cst_46 = arith.constant 1.000000e+00 : f32
    %221 = vector.broadcast %cst_46 : f32 to vector<8x32xf32>
    %222 = arith.addf %221, %220 : vector<8x32xf32>
    %223 = arith.divf %221, %222 : vector<8x32xf32>
    %224 = arith.mulf %215, %163 : vector<8x32xf32>
    %225 = arith.mulf %209, %217 : vector<8x32xf32>
    %226 = arith.addf %224, %225 : vector<8x32xf32>
    %227 = math.tanh %226 : vector<8x32xf32>
    %228 = arith.mulf %223, %227 : vector<8x32xf32>
    %cst_47 = arith.constant dense<0.000000e+00> : vector<8x128xf32>
    %229 = tpu.matmul %228, %8, %cst_47 {dimension_numbers = #tpu.dot_dimension_numbers<[1], [0], [0], [1], [0, 0, 1, 1], [], []>} : vector<8x32xf32>, vector<32x128xf32>, vector<8x128xf32> -> vector<8x128xf32>
    %cst_48 = arith.constant dense<0.000000e+00> : vector<8x128xf32>
    %230 = tpu.matmul %195, %9, %cst_48 {dimension_numbers = #tpu.dot_dimension_numbers<[1], [0], [0], [1], [0, 0, 1, 1], [], []>} : vector<8x32xf32>, vector<32x128xf32>, vector<8x128xf32> -> vector<8x128xf32>
    %231 = arith.addf %229, %230 : vector<8x128xf32>
    %232 = vector.broadcast %10 : vector<1x128xf32> to vector<8x128xf32>
    %233 = arith.addf %231, %232 : vector<8x128xf32>
    %234 = vector.extract_strided_slice %233 {offsets = [0, 0], sizes = [8, 32], strides = [1, 1]} : vector<8x128xf32> to vector<8x32xf32>
    %235 = arith.negf %234 : vector<8x32xf32>
    %236 = math.exp %235 : vector<8x32xf32>
    %cst_49 = arith.constant 1.000000e+00 : f32
    %237 = vector.broadcast %cst_49 : f32 to vector<8x32xf32>
    %238 = arith.addf %237, %236 : vector<8x32xf32>
    %239 = arith.divf %237, %238 : vector<8x32xf32>
    %240 = vector.extract_strided_slice %233 {offsets = [0, 32], sizes = [8, 32], strides = [1, 1]} : vector<8x128xf32> to vector<8x32xf32>
    %241 = arith.negf %240 : vector<8x32xf32>
    %242 = math.exp %241 : vector<8x32xf32>
    %cst_50 = arith.constant 1.000000e+00 : f32
    %243 = vector.broadcast %cst_50 : f32 to vector<8x32xf32>
    %244 = arith.addf %243, %242 : vector<8x32xf32>
    %245 = arith.divf %243, %244 : vector<8x32xf32>
    %246 = vector.extract_strided_slice %233 {offsets = [0, 64], sizes = [8, 32], strides = [1, 1]} : vector<8x128xf32> to vector<8x32xf32>
    %247 = math.tanh %246 : vector<8x32xf32>
    %248 = vector.extract_strided_slice %233 {offsets = [0, 96], sizes = [8, 32], strides = [1, 1]} : vector<8x128xf32> to vector<8x32xf32>
    %249 = arith.negf %248 : vector<8x32xf32>
    %250 = math.exp %249 : vector<8x32xf32>
    %cst_51 = arith.constant 1.000000e+00 : f32
    %251 = vector.broadcast %cst_51 : f32 to vector<8x32xf32>
    %252 = arith.addf %251, %250 : vector<8x32xf32>
    %253 = arith.divf %251, %252 : vector<8x32xf32>
    %254 = arith.mulf %245, %193 : vector<8x32xf32>
    %255 = arith.mulf %239, %247 : vector<8x32xf32>
    %256 = arith.addf %254, %255 : vector<8x32xf32>
    %257 = math.tanh %256 : vector<8x32xf32>
    %258 = arith.mulf %253, %257 : vector<8x32xf32>
    %c4_i32 = arith.constant 4 : i32
    %259 = vector.broadcast %c4_i32 : i32 to vector<8x1xi32>
    %260 = arith.cmpi eq, %6, %259 : vector<8x1xi32>
    %261 = vector.shape_cast %260 : vector<8x1xi1> to vector<8x1xi1>
    %262 = vector.broadcast %261 : vector<8x1xi1> to vector<8x32xi1>
    %263 = arith.select %262, %258, %200 : vector<8x32xi1>, vector<8x32xf32>
    %264 = vector.extract_strided_slice %5 {offsets = [32, 0], sizes = [8, 128], strides = [1, 1]} : vector<80x128xf32> to vector<8x128xf32>
    %cst_52 = arith.constant dense<0.000000e+00> : vector<8x128xf32>
    %265 = tpu.matmul %228, %7, %cst_52 {dimension_numbers = #tpu.dot_dimension_numbers<[1], [0], [0], [1], [0, 0, 1, 1], [], []>} : vector<8x32xf32>, vector<32x128xf32>, vector<8x128xf32> -> vector<8x128xf32>
    %266 = arith.addf %264, %265 : vector<8x128xf32>
    %267 = vector.extract_strided_slice %266 {offsets = [0, 0], sizes = [8, 32], strides = [1, 1]} : vector<8x128xf32> to vector<8x32xf32>
    %268 = arith.negf %267 : vector<8x32xf32>
    %269 = math.exp %268 : vector<8x32xf32>
    %cst_53 = arith.constant 1.000000e+00 : f32
    %270 = vector.broadcast %cst_53 : f32 to vector<8x32xf32>
    %271 = arith.addf %270, %269 : vector<8x32xf32>
    %272 = arith.divf %270, %271 : vector<8x32xf32>
    %273 = vector.extract_strided_slice %266 {offsets = [0, 32], sizes = [8, 32], strides = [1, 1]} : vector<8x128xf32> to vector<8x32xf32>
    %274 = arith.negf %273 : vector<8x32xf32>
    %275 = math.exp %274 : vector<8x32xf32>
    %cst_54 = arith.constant 1.000000e+00 : f32
    %276 = vector.broadcast %cst_54 : f32 to vector<8x32xf32>
    %277 = arith.addf %276, %275 : vector<8x32xf32>
    %278 = arith.divf %276, %277 : vector<8x32xf32>
    %279 = vector.extract_strided_slice %266 {offsets = [0, 64], sizes = [8, 32], strides = [1, 1]} : vector<8x128xf32> to vector<8x32xf32>
    %280 = math.tanh %279 : vector<8x32xf32>
    %281 = vector.extract_strided_slice %266 {offsets = [0, 96], sizes = [8, 32], strides = [1, 1]} : vector<8x128xf32> to vector<8x32xf32>
    %282 = arith.negf %281 : vector<8x32xf32>
    %283 = math.exp %282 : vector<8x32xf32>
    %cst_55 = arith.constant 1.000000e+00 : f32
    %284 = vector.broadcast %cst_55 : f32 to vector<8x32xf32>
    %285 = arith.addf %284, %283 : vector<8x32xf32>
    %286 = arith.divf %284, %285 : vector<8x32xf32>
    %287 = arith.mulf %278, %226 : vector<8x32xf32>
    %288 = arith.mulf %272, %280 : vector<8x32xf32>
    %289 = arith.addf %287, %288 : vector<8x32xf32>
    %290 = math.tanh %289 : vector<8x32xf32>
    %291 = arith.mulf %286, %290 : vector<8x32xf32>
    %cst_56 = arith.constant dense<0.000000e+00> : vector<8x128xf32>
    %292 = tpu.matmul %291, %8, %cst_56 {dimension_numbers = #tpu.dot_dimension_numbers<[1], [0], [0], [1], [0, 0, 1, 1], [], []>} : vector<8x32xf32>, vector<32x128xf32>, vector<8x128xf32> -> vector<8x128xf32>
    %cst_57 = arith.constant dense<0.000000e+00> : vector<8x128xf32>
    %293 = tpu.matmul %258, %9, %cst_57 {dimension_numbers = #tpu.dot_dimension_numbers<[1], [0], [0], [1], [0, 0, 1, 1], [], []>} : vector<8x32xf32>, vector<32x128xf32>, vector<8x128xf32> -> vector<8x128xf32>
    %294 = arith.addf %292, %293 : vector<8x128xf32>
    %295 = vector.broadcast %10 : vector<1x128xf32> to vector<8x128xf32>
    %296 = arith.addf %294, %295 : vector<8x128xf32>
    %297 = vector.extract_strided_slice %296 {offsets = [0, 0], sizes = [8, 32], strides = [1, 1]} : vector<8x128xf32> to vector<8x32xf32>
    %298 = arith.negf %297 : vector<8x32xf32>
    %299 = math.exp %298 : vector<8x32xf32>
    %cst_58 = arith.constant 1.000000e+00 : f32
    %300 = vector.broadcast %cst_58 : f32 to vector<8x32xf32>
    %301 = arith.addf %300, %299 : vector<8x32xf32>
    %302 = arith.divf %300, %301 : vector<8x32xf32>
    %303 = vector.extract_strided_slice %296 {offsets = [0, 32], sizes = [8, 32], strides = [1, 1]} : vector<8x128xf32> to vector<8x32xf32>
    %304 = arith.negf %303 : vector<8x32xf32>
    %305 = math.exp %304 : vector<8x32xf32>
    %cst_59 = arith.constant 1.000000e+00 : f32
    %306 = vector.broadcast %cst_59 : f32 to vector<8x32xf32>
    %307 = arith.addf %306, %305 : vector<8x32xf32>
    %308 = arith.divf %306, %307 : vector<8x32xf32>
    %309 = vector.extract_strided_slice %296 {offsets = [0, 64], sizes = [8, 32], strides = [1, 1]} : vector<8x128xf32> to vector<8x32xf32>
    %310 = math.tanh %309 : vector<8x32xf32>
    %311 = vector.extract_strided_slice %296 {offsets = [0, 96], sizes = [8, 32], strides = [1, 1]} : vector<8x128xf32> to vector<8x32xf32>
    %312 = arith.negf %311 : vector<8x32xf32>
    %313 = math.exp %312 : vector<8x32xf32>
    %cst_60 = arith.constant 1.000000e+00 : f32
    %314 = vector.broadcast %cst_60 : f32 to vector<8x32xf32>
    %315 = arith.addf %314, %313 : vector<8x32xf32>
    %316 = arith.divf %314, %315 : vector<8x32xf32>
    %317 = arith.mulf %308, %256 : vector<8x32xf32>
    %318 = arith.mulf %302, %310 : vector<8x32xf32>
    %319 = arith.addf %317, %318 : vector<8x32xf32>
    %320 = math.tanh %319 : vector<8x32xf32>
    %321 = arith.mulf %316, %320 : vector<8x32xf32>
    %c5_i32 = arith.constant 5 : i32
    %322 = vector.broadcast %c5_i32 : i32 to vector<8x1xi32>
    %323 = arith.cmpi eq, %6, %322 : vector<8x1xi32>
    %324 = vector.shape_cast %323 : vector<8x1xi1> to vector<8x1xi1>
    %325 = vector.broadcast %324 : vector<8x1xi1> to vector<8x32xi1>
    %326 = arith.select %325, %321, %263 : vector<8x32xi1>, vector<8x32xf32>
    %327 = vector.extract_strided_slice %5 {offsets = [40, 0], sizes = [8, 128], strides = [1, 1]} : vector<80x128xf32> to vector<8x128xf32>
    %cst_61 = arith.constant dense<0.000000e+00> : vector<8x128xf32>
    %328 = tpu.matmul %291, %7, %cst_61 {dimension_numbers = #tpu.dot_dimension_numbers<[1], [0], [0], [1], [0, 0, 1, 1], [], []>} : vector<8x32xf32>, vector<32x128xf32>, vector<8x128xf32> -> vector<8x128xf32>
    %329 = arith.addf %327, %328 : vector<8x128xf32>
    %330 = vector.extract_strided_slice %329 {offsets = [0, 0], sizes = [8, 32], strides = [1, 1]} : vector<8x128xf32> to vector<8x32xf32>
    %331 = arith.negf %330 : vector<8x32xf32>
    %332 = math.exp %331 : vector<8x32xf32>
    %cst_62 = arith.constant 1.000000e+00 : f32
    %333 = vector.broadcast %cst_62 : f32 to vector<8x32xf32>
    %334 = arith.addf %333, %332 : vector<8x32xf32>
    %335 = arith.divf %333, %334 : vector<8x32xf32>
    %336 = vector.extract_strided_slice %329 {offsets = [0, 32], sizes = [8, 32], strides = [1, 1]} : vector<8x128xf32> to vector<8x32xf32>
    %337 = arith.negf %336 : vector<8x32xf32>
    %338 = math.exp %337 : vector<8x32xf32>
    %cst_63 = arith.constant 1.000000e+00 : f32
    %339 = vector.broadcast %cst_63 : f32 to vector<8x32xf32>
    %340 = arith.addf %339, %338 : vector<8x32xf32>
    %341 = arith.divf %339, %340 : vector<8x32xf32>
    %342 = vector.extract_strided_slice %329 {offsets = [0, 64], sizes = [8, 32], strides = [1, 1]} : vector<8x128xf32> to vector<8x32xf32>
    %343 = math.tanh %342 : vector<8x32xf32>
    %344 = vector.extract_strided_slice %329 {offsets = [0, 96], sizes = [8, 32], strides = [1, 1]} : vector<8x128xf32> to vector<8x32xf32>
    %345 = arith.negf %344 : vector<8x32xf32>
    %346 = math.exp %345 : vector<8x32xf32>
    %cst_64 = arith.constant 1.000000e+00 : f32
    %347 = vector.broadcast %cst_64 : f32 to vector<8x32xf32>
    %348 = arith.addf %347, %346 : vector<8x32xf32>
    %349 = arith.divf %347, %348 : vector<8x32xf32>
    %350 = arith.mulf %341, %289 : vector<8x32xf32>
    %351 = arith.mulf %335, %343 : vector<8x32xf32>
    %352 = arith.addf %350, %351 : vector<8x32xf32>
    %353 = math.tanh %352 : vector<8x32xf32>
    %354 = arith.mulf %349, %353 : vector<8x32xf32>
    %cst_65 = arith.constant dense<0.000000e+00> : vector<8x128xf32>
    %355 = tpu.matmul %354, %8, %cst_65 {dimension_numbers = #tpu.dot_dimension_numbers<[1], [0], [0], [1], [0, 0, 1, 1], [], []>} : vector<8x32xf32>, vector<32x128xf32>, vector<8x128xf32> -> vector<8x128xf32>
    %cst_66 = arith.constant dense<0.000000e+00> : vector<8x128xf32>
    %356 = tpu.matmul %321, %9, %cst_66 {dimension_numbers = #tpu.dot_dimension_numbers<[1], [0], [0], [1], [0, 0, 1, 1], [], []>} : vector<8x32xf32>, vector<32x128xf32>, vector<8x128xf32> -> vector<8x128xf32>
    %357 = arith.addf %355, %356 : vector<8x128xf32>
    %358 = vector.broadcast %10 : vector<1x128xf32> to vector<8x128xf32>
    %359 = arith.addf %357, %358 : vector<8x128xf32>
    %360 = vector.extract_strided_slice %359 {offsets = [0, 0], sizes = [8, 32], strides = [1, 1]} : vector<8x128xf32> to vector<8x32xf32>
    %361 = arith.negf %360 : vector<8x32xf32>
    %362 = math.exp %361 : vector<8x32xf32>
    %cst_67 = arith.constant 1.000000e+00 : f32
    %363 = vector.broadcast %cst_67 : f32 to vector<8x32xf32>
    %364 = arith.addf %363, %362 : vector<8x32xf32>
    %365 = arith.divf %363, %364 : vector<8x32xf32>
    %366 = vector.extract_strided_slice %359 {offsets = [0, 32], sizes = [8, 32], strides = [1, 1]} : vector<8x128xf32> to vector<8x32xf32>
    %367 = arith.negf %366 : vector<8x32xf32>
    %368 = math.exp %367 : vector<8x32xf32>
    %cst_68 = arith.constant 1.000000e+00 : f32
    %369 = vector.broadcast %cst_68 : f32 to vector<8x32xf32>
    %370 = arith.addf %369, %368 : vector<8x32xf32>
    %371 = arith.divf %369, %370 : vector<8x32xf32>
    %372 = vector.extract_strided_slice %359 {offsets = [0, 64], sizes = [8, 32], strides = [1, 1]} : vector<8x128xf32> to vector<8x32xf32>
    %373 = math.tanh %372 : vector<8x32xf32>
    %374 = vector.extract_strided_slice %359 {offsets = [0, 96], sizes = [8, 32], strides = [1, 1]} : vector<8x128xf32> to vector<8x32xf32>
    %375 = arith.negf %374 : vector<8x32xf32>
    %376 = math.exp %375 : vector<8x32xf32>
    %cst_69 = arith.constant 1.000000e+00 : f32
    %377 = vector.broadcast %cst_69 : f32 to vector<8x32xf32>
    %378 = arith.addf %377, %376 : vector<8x32xf32>
    %379 = arith.divf %377, %378 : vector<8x32xf32>
    %380 = arith.mulf %371, %319 : vector<8x32xf32>
    %381 = arith.mulf %365, %373 : vector<8x32xf32>
    %382 = arith.addf %380, %381 : vector<8x32xf32>
    %383 = math.tanh %382 : vector<8x32xf32>
    %384 = arith.mulf %379, %383 : vector<8x32xf32>
    %c6_i32 = arith.constant 6 : i32
    %385 = vector.broadcast %c6_i32 : i32 to vector<8x1xi32>
    %386 = arith.cmpi eq, %6, %385 : vector<8x1xi32>
    %387 = vector.shape_cast %386 : vector<8x1xi1> to vector<8x1xi1>
    %388 = vector.broadcast %387 : vector<8x1xi1> to vector<8x32xi1>
    %389 = arith.select %388, %384, %326 : vector<8x32xi1>, vector<8x32xf32>
    %390 = vector.extract_strided_slice %5 {offsets = [48, 0], sizes = [8, 128], strides = [1, 1]} : vector<80x128xf32> to vector<8x128xf32>
    %cst_70 = arith.constant dense<0.000000e+00> : vector<8x128xf32>
    %391 = tpu.matmul %354, %7, %cst_70 {dimension_numbers = #tpu.dot_dimension_numbers<[1], [0], [0], [1], [0, 0, 1, 1], [], []>} : vector<8x32xf32>, vector<32x128xf32>, vector<8x128xf32> -> vector<8x128xf32>
    %392 = arith.addf %390, %391 : vector<8x128xf32>
    %393 = vector.extract_strided_slice %392 {offsets = [0, 0], sizes = [8, 32], strides = [1, 1]} : vector<8x128xf32> to vector<8x32xf32>
    %394 = arith.negf %393 : vector<8x32xf32>
    %395 = math.exp %394 : vector<8x32xf32>
    %cst_71 = arith.constant 1.000000e+00 : f32
    %396 = vector.broadcast %cst_71 : f32 to vector<8x32xf32>
    %397 = arith.addf %396, %395 : vector<8x32xf32>
    %398 = arith.divf %396, %397 : vector<8x32xf32>
    %399 = vector.extract_strided_slice %392 {offsets = [0, 32], sizes = [8, 32], strides = [1, 1]} : vector<8x128xf32> to vector<8x32xf32>
    %400 = arith.negf %399 : vector<8x32xf32>
    %401 = math.exp %400 : vector<8x32xf32>
    %cst_72 = arith.constant 1.000000e+00 : f32
    %402 = vector.broadcast %cst_72 : f32 to vector<8x32xf32>
    %403 = arith.addf %402, %401 : vector<8x32xf32>
    %404 = arith.divf %402, %403 : vector<8x32xf32>
    %405 = vector.extract_strided_slice %392 {offsets = [0, 64], sizes = [8, 32], strides = [1, 1]} : vector<8x128xf32> to vector<8x32xf32>
    %406 = math.tanh %405 : vector<8x32xf32>
    %407 = vector.extract_strided_slice %392 {offsets = [0, 96], sizes = [8, 32], strides = [1, 1]} : vector<8x128xf32> to vector<8x32xf32>
    %408 = arith.negf %407 : vector<8x32xf32>
    %409 = math.exp %408 : vector<8x32xf32>
    %cst_73 = arith.constant 1.000000e+00 : f32
    %410 = vector.broadcast %cst_73 : f32 to vector<8x32xf32>
    %411 = arith.addf %410, %409 : vector<8x32xf32>
    %412 = arith.divf %410, %411 : vector<8x32xf32>
    %413 = arith.mulf %404, %352 : vector<8x32xf32>
    %414 = arith.mulf %398, %406 : vector<8x32xf32>
    %415 = arith.addf %413, %414 : vector<8x32xf32>
    %416 = math.tanh %415 : vector<8x32xf32>
    %417 = arith.mulf %412, %416 : vector<8x32xf32>
    %cst_74 = arith.constant dense<0.000000e+00> : vector<8x128xf32>
    %418 = tpu.matmul %417, %8, %cst_74 {dimension_numbers = #tpu.dot_dimension_numbers<[1], [0], [0], [1], [0, 0, 1, 1], [], []>} : vector<8x32xf32>, vector<32x128xf32>, vector<8x128xf32> -> vector<8x128xf32>
    %cst_75 = arith.constant dense<0.000000e+00> : vector<8x128xf32>
    %419 = tpu.matmul %384, %9, %cst_75 {dimension_numbers = #tpu.dot_dimension_numbers<[1], [0], [0], [1], [0, 0, 1, 1], [], []>} : vector<8x32xf32>, vector<32x128xf32>, vector<8x128xf32> -> vector<8x128xf32>
    %420 = arith.addf %418, %419 : vector<8x128xf32>
    %421 = vector.broadcast %10 : vector<1x128xf32> to vector<8x128xf32>
    %422 = arith.addf %420, %421 : vector<8x128xf32>
    %423 = vector.extract_strided_slice %422 {offsets = [0, 0], sizes = [8, 32], strides = [1, 1]} : vector<8x128xf32> to vector<8x32xf32>
    %424 = arith.negf %423 : vector<8x32xf32>
    %425 = math.exp %424 : vector<8x32xf32>
    %cst_76 = arith.constant 1.000000e+00 : f32
    %426 = vector.broadcast %cst_76 : f32 to vector<8x32xf32>
    %427 = arith.addf %426, %425 : vector<8x32xf32>
    %428 = arith.divf %426, %427 : vector<8x32xf32>
    %429 = vector.extract_strided_slice %422 {offsets = [0, 32], sizes = [8, 32], strides = [1, 1]} : vector<8x128xf32> to vector<8x32xf32>
    %430 = arith.negf %429 : vector<8x32xf32>
    %431 = math.exp %430 : vector<8x32xf32>
    %cst_77 = arith.constant 1.000000e+00 : f32
    %432 = vector.broadcast %cst_77 : f32 to vector<8x32xf32>
    %433 = arith.addf %432, %431 : vector<8x32xf32>
    %434 = arith.divf %432, %433 : vector<8x32xf32>
    %435 = vector.extract_strided_slice %422 {offsets = [0, 64], sizes = [8, 32], strides = [1, 1]} : vector<8x128xf32> to vector<8x32xf32>
    %436 = math.tanh %435 : vector<8x32xf32>
    %437 = vector.extract_strided_slice %422 {offsets = [0, 96], sizes = [8, 32], strides = [1, 1]} : vector<8x128xf32> to vector<8x32xf32>
    %438 = arith.negf %437 : vector<8x32xf32>
    %439 = math.exp %438 : vector<8x32xf32>
    %cst_78 = arith.constant 1.000000e+00 : f32
    %440 = vector.broadcast %cst_78 : f32 to vector<8x32xf32>
    %441 = arith.addf %440, %439 : vector<8x32xf32>
    %442 = arith.divf %440, %441 : vector<8x32xf32>
    %443 = arith.mulf %434, %382 : vector<8x32xf32>
    %444 = arith.mulf %428, %436 : vector<8x32xf32>
    %445 = arith.addf %443, %444 : vector<8x32xf32>
    %446 = math.tanh %445 : vector<8x32xf32>
    %447 = arith.mulf %442, %446 : vector<8x32xf32>
    %c7_i32 = arith.constant 7 : i32
    %448 = vector.broadcast %c7_i32 : i32 to vector<8x1xi32>
    %449 = arith.cmpi eq, %6, %448 : vector<8x1xi32>
    %450 = vector.shape_cast %449 : vector<8x1xi1> to vector<8x1xi1>
    %451 = vector.broadcast %450 : vector<8x1xi1> to vector<8x32xi1>
    %452 = arith.select %451, %447, %389 : vector<8x32xi1>, vector<8x32xf32>
    %453 = vector.extract_strided_slice %5 {offsets = [56, 0], sizes = [8, 128], strides = [1, 1]} : vector<80x128xf32> to vector<8x128xf32>
    %cst_79 = arith.constant dense<0.000000e+00> : vector<8x128xf32>
    %454 = tpu.matmul %417, %7, %cst_79 {dimension_numbers = #tpu.dot_dimension_numbers<[1], [0], [0], [1], [0, 0, 1, 1], [], []>} : vector<8x32xf32>, vector<32x128xf32>, vector<8x128xf32> -> vector<8x128xf32>
    %455 = arith.addf %453, %454 : vector<8x128xf32>
    %456 = vector.extract_strided_slice %455 {offsets = [0, 0], sizes = [8, 32], strides = [1, 1]} : vector<8x128xf32> to vector<8x32xf32>
    %457 = arith.negf %456 : vector<8x32xf32>
    %458 = math.exp %457 : vector<8x32xf32>
    %cst_80 = arith.constant 1.000000e+00 : f32
    %459 = vector.broadcast %cst_80 : f32 to vector<8x32xf32>
    %460 = arith.addf %459, %458 : vector<8x32xf32>
    %461 = arith.divf %459, %460 : vector<8x32xf32>
    %462 = vector.extract_strided_slice %455 {offsets = [0, 32], sizes = [8, 32], strides = [1, 1]} : vector<8x128xf32> to vector<8x32xf32>
    %463 = arith.negf %462 : vector<8x32xf32>
    %464 = math.exp %463 : vector<8x32xf32>
    %cst_81 = arith.constant 1.000000e+00 : f32
    %465 = vector.broadcast %cst_81 : f32 to vector<8x32xf32>
    %466 = arith.addf %465, %464 : vector<8x32xf32>
    %467 = arith.divf %465, %466 : vector<8x32xf32>
    %468 = vector.extract_strided_slice %455 {offsets = [0, 64], sizes = [8, 32], strides = [1, 1]} : vector<8x128xf32> to vector<8x32xf32>
    %469 = math.tanh %468 : vector<8x32xf32>
    %470 = vector.extract_strided_slice %455 {offsets = [0, 96], sizes = [8, 32], strides = [1, 1]} : vector<8x128xf32> to vector<8x32xf32>
    %471 = arith.negf %470 : vector<8x32xf32>
    %472 = math.exp %471 : vector<8x32xf32>
    %cst_82 = arith.constant 1.000000e+00 : f32
    %473 = vector.broadcast %cst_82 : f32 to vector<8x32xf32>
    %474 = arith.addf %473, %472 : vector<8x32xf32>
    %475 = arith.divf %473, %474 : vector<8x32xf32>
    %476 = arith.mulf %467, %415 : vector<8x32xf32>
    %477 = arith.mulf %461, %469 : vector<8x32xf32>
    %478 = arith.addf %476, %477 : vector<8x32xf32>
    %479 = math.tanh %478 : vector<8x32xf32>
    %480 = arith.mulf %475, %479 : vector<8x32xf32>
    %cst_83 = arith.constant dense<0.000000e+00> : vector<8x128xf32>
    %481 = tpu.matmul %480, %8, %cst_83 {dimension_numbers = #tpu.dot_dimension_numbers<[1], [0], [0], [1], [0, 0, 1, 1], [], []>} : vector<8x32xf32>, vector<32x128xf32>, vector<8x128xf32> -> vector<8x128xf32>
    %cst_84 = arith.constant dense<0.000000e+00> : vector<8x128xf32>
    %482 = tpu.matmul %447, %9, %cst_84 {dimension_numbers = #tpu.dot_dimension_numbers<[1], [0], [0], [1], [0, 0, 1, 1], [], []>} : vector<8x32xf32>, vector<32x128xf32>, vector<8x128xf32> -> vector<8x128xf32>
    %483 = arith.addf %481, %482 : vector<8x128xf32>
    %484 = vector.broadcast %10 : vector<1x128xf32> to vector<8x128xf32>
    %485 = arith.addf %483, %484 : vector<8x128xf32>
    %486 = vector.extract_strided_slice %485 {offsets = [0, 0], sizes = [8, 32], strides = [1, 1]} : vector<8x128xf32> to vector<8x32xf32>
    %487 = arith.negf %486 : vector<8x32xf32>
    %488 = math.exp %487 : vector<8x32xf32>
    %cst_85 = arith.constant 1.000000e+00 : f32
    %489 = vector.broadcast %cst_85 : f32 to vector<8x32xf32>
    %490 = arith.addf %489, %488 : vector<8x32xf32>
    %491 = arith.divf %489, %490 : vector<8x32xf32>
    %492 = vector.extract_strided_slice %485 {offsets = [0, 32], sizes = [8, 32], strides = [1, 1]} : vector<8x128xf32> to vector<8x32xf32>
    %493 = arith.negf %492 : vector<8x32xf32>
    %494 = math.exp %493 : vector<8x32xf32>
    %cst_86 = arith.constant 1.000000e+00 : f32
    %495 = vector.broadcast %cst_86 : f32 to vector<8x32xf32>
    %496 = arith.addf %495, %494 : vector<8x32xf32>
    %497 = arith.divf %495, %496 : vector<8x32xf32>
    %498 = vector.extract_strided_slice %485 {offsets = [0, 64], sizes = [8, 32], strides = [1, 1]} : vector<8x128xf32> to vector<8x32xf32>
    %499 = math.tanh %498 : vector<8x32xf32>
    %500 = vector.extract_strided_slice %485 {offsets = [0, 96], sizes = [8, 32], strides = [1, 1]} : vector<8x128xf32> to vector<8x32xf32>
    %501 = arith.negf %500 : vector<8x32xf32>
    %502 = math.exp %501 : vector<8x32xf32>
    %cst_87 = arith.constant 1.000000e+00 : f32
    %503 = vector.broadcast %cst_87 : f32 to vector<8x32xf32>
    %504 = arith.addf %503, %502 : vector<8x32xf32>
    %505 = arith.divf %503, %504 : vector<8x32xf32>
    %506 = arith.mulf %497, %445 : vector<8x32xf32>
    %507 = arith.mulf %491, %499 : vector<8x32xf32>
    %508 = arith.addf %506, %507 : vector<8x32xf32>
    %509 = math.tanh %508 : vector<8x32xf32>
    %510 = arith.mulf %505, %509 : vector<8x32xf32>
    %c8_i32 = arith.constant 8 : i32
    %511 = vector.broadcast %c8_i32 : i32 to vector<8x1xi32>
    %512 = arith.cmpi eq, %6, %511 : vector<8x1xi32>
    %513 = vector.shape_cast %512 : vector<8x1xi1> to vector<8x1xi1>
    %514 = vector.broadcast %513 : vector<8x1xi1> to vector<8x32xi1>
    %515 = arith.select %514, %510, %452 : vector<8x32xi1>, vector<8x32xf32>
    %516 = vector.extract_strided_slice %5 {offsets = [64, 0], sizes = [8, 128], strides = [1, 1]} : vector<80x128xf32> to vector<8x128xf32>
    %cst_88 = arith.constant dense<0.000000e+00> : vector<8x128xf32>
    %517 = tpu.matmul %480, %7, %cst_88 {dimension_numbers = #tpu.dot_dimension_numbers<[1], [0], [0], [1], [0, 0, 1, 1], [], []>} : vector<8x32xf32>, vector<32x128xf32>, vector<8x128xf32> -> vector<8x128xf32>
    %518 = arith.addf %516, %517 : vector<8x128xf32>
    %519 = vector.extract_strided_slice %518 {offsets = [0, 0], sizes = [8, 32], strides = [1, 1]} : vector<8x128xf32> to vector<8x32xf32>
    %520 = arith.negf %519 : vector<8x32xf32>
    %521 = math.exp %520 : vector<8x32xf32>
    %cst_89 = arith.constant 1.000000e+00 : f32
    %522 = vector.broadcast %cst_89 : f32 to vector<8x32xf32>
    %523 = arith.addf %522, %521 : vector<8x32xf32>
    %524 = arith.divf %522, %523 : vector<8x32xf32>
    %525 = vector.extract_strided_slice %518 {offsets = [0, 32], sizes = [8, 32], strides = [1, 1]} : vector<8x128xf32> to vector<8x32xf32>
    %526 = arith.negf %525 : vector<8x32xf32>
    %527 = math.exp %526 : vector<8x32xf32>
    %cst_90 = arith.constant 1.000000e+00 : f32
    %528 = vector.broadcast %cst_90 : f32 to vector<8x32xf32>
    %529 = arith.addf %528, %527 : vector<8x32xf32>
    %530 = arith.divf %528, %529 : vector<8x32xf32>
    %531 = vector.extract_strided_slice %518 {offsets = [0, 64], sizes = [8, 32], strides = [1, 1]} : vector<8x128xf32> to vector<8x32xf32>
    %532 = math.tanh %531 : vector<8x32xf32>
    %533 = vector.extract_strided_slice %518 {offsets = [0, 96], sizes = [8, 32], strides = [1, 1]} : vector<8x128xf32> to vector<8x32xf32>
    %534 = arith.negf %533 : vector<8x32xf32>
    %535 = math.exp %534 : vector<8x32xf32>
    %cst_91 = arith.constant 1.000000e+00 : f32
    %536 = vector.broadcast %cst_91 : f32 to vector<8x32xf32>
    %537 = arith.addf %536, %535 : vector<8x32xf32>
    %538 = arith.divf %536, %537 : vector<8x32xf32>
    %539 = arith.mulf %530, %478 : vector<8x32xf32>
    %540 = arith.mulf %524, %532 : vector<8x32xf32>
    %541 = arith.addf %539, %540 : vector<8x32xf32>
    %542 = math.tanh %541 : vector<8x32xf32>
    %543 = arith.mulf %538, %542 : vector<8x32xf32>
    %cst_92 = arith.constant dense<0.000000e+00> : vector<8x128xf32>
    %544 = tpu.matmul %543, %8, %cst_92 {dimension_numbers = #tpu.dot_dimension_numbers<[1], [0], [0], [1], [0, 0, 1, 1], [], []>} : vector<8x32xf32>, vector<32x128xf32>, vector<8x128xf32> -> vector<8x128xf32>
    %cst_93 = arith.constant dense<0.000000e+00> : vector<8x128xf32>
    %545 = tpu.matmul %510, %9, %cst_93 {dimension_numbers = #tpu.dot_dimension_numbers<[1], [0], [0], [1], [0, 0, 1, 1], [], []>} : vector<8x32xf32>, vector<32x128xf32>, vector<8x128xf32> -> vector<8x128xf32>
    %546 = arith.addf %544, %545 : vector<8x128xf32>
    %547 = vector.broadcast %10 : vector<1x128xf32> to vector<8x128xf32>
    %548 = arith.addf %546, %547 : vector<8x128xf32>
    %549 = vector.extract_strided_slice %548 {offsets = [0, 0], sizes = [8, 32], strides = [1, 1]} : vector<8x128xf32> to vector<8x32xf32>
    %550 = arith.negf %549 : vector<8x32xf32>
    %551 = math.exp %550 : vector<8x32xf32>
    %cst_94 = arith.constant 1.000000e+00 : f32
    %552 = vector.broadcast %cst_94 : f32 to vector<8x32xf32>
    %553 = arith.addf %552, %551 : vector<8x32xf32>
    %554 = arith.divf %552, %553 : vector<8x32xf32>
    %555 = vector.extract_strided_slice %548 {offsets = [0, 32], sizes = [8, 32], strides = [1, 1]} : vector<8x128xf32> to vector<8x32xf32>
    %556 = arith.negf %555 : vector<8x32xf32>
    %557 = math.exp %556 : vector<8x32xf32>
    %cst_95 = arith.constant 1.000000e+00 : f32
    %558 = vector.broadcast %cst_95 : f32 to vector<8x32xf32>
    %559 = arith.addf %558, %557 : vector<8x32xf32>
    %560 = arith.divf %558, %559 : vector<8x32xf32>
    %561 = vector.extract_strided_slice %548 {offsets = [0, 64], sizes = [8, 32], strides = [1, 1]} : vector<8x128xf32> to vector<8x32xf32>
    %562 = math.tanh %561 : vector<8x32xf32>
    %563 = vector.extract_strided_slice %548 {offsets = [0, 96], sizes = [8, 32], strides = [1, 1]} : vector<8x128xf32> to vector<8x32xf32>
    %564 = arith.negf %563 : vector<8x32xf32>
    %565 = math.exp %564 : vector<8x32xf32>
    %cst_96 = arith.constant 1.000000e+00 : f32
    %566 = vector.broadcast %cst_96 : f32 to vector<8x32xf32>
    %567 = arith.addf %566, %565 : vector<8x32xf32>
    %568 = arith.divf %566, %567 : vector<8x32xf32>
    %569 = arith.mulf %560, %508 : vector<8x32xf32>
    %570 = arith.mulf %554, %562 : vector<8x32xf32>
    %571 = arith.addf %569, %570 : vector<8x32xf32>
    %572 = math.tanh %571 : vector<8x32xf32>
    %573 = arith.mulf %568, %572 : vector<8x32xf32>
    %c9_i32 = arith.constant 9 : i32
    %574 = vector.broadcast %c9_i32 : i32 to vector<8x1xi32>
    %575 = arith.cmpi eq, %6, %574 : vector<8x1xi32>
    %576 = vector.shape_cast %575 : vector<8x1xi1> to vector<8x1xi1>
    %577 = vector.broadcast %576 : vector<8x1xi1> to vector<8x32xi1>
    %578 = arith.select %577, %573, %515 : vector<8x32xi1>, vector<8x32xf32>
    %579 = vector.extract_strided_slice %5 {offsets = [72, 0], sizes = [8, 128], strides = [1, 1]} : vector<80x128xf32> to vector<8x128xf32>
    %cst_97 = arith.constant dense<0.000000e+00> : vector<8x128xf32>
    %580 = tpu.matmul %543, %7, %cst_97 {dimension_numbers = #tpu.dot_dimension_numbers<[1], [0], [0], [1], [0, 0, 1, 1], [], []>} : vector<8x32xf32>, vector<32x128xf32>, vector<8x128xf32> -> vector<8x128xf32>
    %581 = arith.addf %579, %580 : vector<8x128xf32>
    %582 = vector.extract_strided_slice %581 {offsets = [0, 0], sizes = [8, 32], strides = [1, 1]} : vector<8x128xf32> to vector<8x32xf32>
    %583 = arith.negf %582 : vector<8x32xf32>
    %584 = math.exp %583 : vector<8x32xf32>
    %cst_98 = arith.constant 1.000000e+00 : f32
    %585 = vector.broadcast %cst_98 : f32 to vector<8x32xf32>
    %586 = arith.addf %585, %584 : vector<8x32xf32>
    %587 = arith.divf %585, %586 : vector<8x32xf32>
    %588 = vector.extract_strided_slice %581 {offsets = [0, 32], sizes = [8, 32], strides = [1, 1]} : vector<8x128xf32> to vector<8x32xf32>
    %589 = arith.negf %588 : vector<8x32xf32>
    %590 = math.exp %589 : vector<8x32xf32>
    %cst_99 = arith.constant 1.000000e+00 : f32
    %591 = vector.broadcast %cst_99 : f32 to vector<8x32xf32>
    %592 = arith.addf %591, %590 : vector<8x32xf32>
    %593 = arith.divf %591, %592 : vector<8x32xf32>
    %594 = vector.extract_strided_slice %581 {offsets = [0, 64], sizes = [8, 32], strides = [1, 1]} : vector<8x128xf32> to vector<8x32xf32>
    %595 = math.tanh %594 : vector<8x32xf32>
    %596 = vector.extract_strided_slice %581 {offsets = [0, 96], sizes = [8, 32], strides = [1, 1]} : vector<8x128xf32> to vector<8x32xf32>
    %597 = arith.negf %596 : vector<8x32xf32>
    %598 = math.exp %597 : vector<8x32xf32>
    %cst_100 = arith.constant 1.000000e+00 : f32
    %599 = vector.broadcast %cst_100 : f32 to vector<8x32xf32>
    %600 = arith.addf %599, %598 : vector<8x32xf32>
    %601 = arith.divf %599, %600 : vector<8x32xf32>
    %602 = arith.mulf %593, %541 : vector<8x32xf32>
    %603 = arith.mulf %587, %595 : vector<8x32xf32>
    %604 = arith.addf %602, %603 : vector<8x32xf32>
    %605 = math.tanh %604 : vector<8x32xf32>
    %606 = arith.mulf %601, %605 : vector<8x32xf32>
    %cst_101 = arith.constant dense<0.000000e+00> : vector<8x128xf32>
    %607 = tpu.matmul %606, %8, %cst_101 {dimension_numbers = #tpu.dot_dimension_numbers<[1], [0], [0], [1], [0, 0, 1, 1], [], []>} : vector<8x32xf32>, vector<32x128xf32>, vector<8x128xf32> -> vector<8x128xf32>
    %cst_102 = arith.constant dense<0.000000e+00> : vector<8x128xf32>
    %608 = tpu.matmul %573, %9, %cst_102 {dimension_numbers = #tpu.dot_dimension_numbers<[1], [0], [0], [1], [0, 0, 1, 1], [], []>} : vector<8x32xf32>, vector<32x128xf32>, vector<8x128xf32> -> vector<8x128xf32>
    %609 = arith.addf %607, %608 : vector<8x128xf32>
    %610 = vector.broadcast %10 : vector<1x128xf32> to vector<8x128xf32>
    %611 = arith.addf %609, %610 : vector<8x128xf32>
    %612 = vector.extract_strided_slice %611 {offsets = [0, 0], sizes = [8, 32], strides = [1, 1]} : vector<8x128xf32> to vector<8x32xf32>
    %613 = arith.negf %612 : vector<8x32xf32>
    %614 = math.exp %613 : vector<8x32xf32>
    %cst_103 = arith.constant 1.000000e+00 : f32
    %615 = vector.broadcast %cst_103 : f32 to vector<8x32xf32>
    %616 = arith.addf %615, %614 : vector<8x32xf32>
    %617 = arith.divf %615, %616 : vector<8x32xf32>
    %618 = vector.extract_strided_slice %611 {offsets = [0, 32], sizes = [8, 32], strides = [1, 1]} : vector<8x128xf32> to vector<8x32xf32>
    %619 = arith.negf %618 : vector<8x32xf32>
    %620 = math.exp %619 : vector<8x32xf32>
    %cst_104 = arith.constant 1.000000e+00 : f32
    %621 = vector.broadcast %cst_104 : f32 to vector<8x32xf32>
    %622 = arith.addf %621, %620 : vector<8x32xf32>
    %623 = arith.divf %621, %622 : vector<8x32xf32>
    %624 = vector.extract_strided_slice %611 {offsets = [0, 64], sizes = [8, 32], strides = [1, 1]} : vector<8x128xf32> to vector<8x32xf32>
    %625 = math.tanh %624 : vector<8x32xf32>
    %626 = vector.extract_strided_slice %611 {offsets = [0, 96], sizes = [8, 32], strides = [1, 1]} : vector<8x128xf32> to vector<8x32xf32>
    %627 = arith.negf %626 : vector<8x32xf32>
    %628 = math.exp %627 : vector<8x32xf32>
    %cst_105 = arith.constant 1.000000e+00 : f32
    %629 = vector.broadcast %cst_105 : f32 to vector<8x32xf32>
    %630 = arith.addf %629, %628 : vector<8x32xf32>
    %631 = arith.divf %629, %630 : vector<8x32xf32>
    %632 = arith.mulf %623, %571 : vector<8x32xf32>
    %633 = arith.mulf %617, %625 : vector<8x32xf32>
    %634 = arith.addf %632, %633 : vector<8x32xf32>
    %635 = math.tanh %634 : vector<8x32xf32>
    %636 = arith.mulf %631, %635 : vector<8x32xf32>
    %c10_i32 = arith.constant 10 : i32
    %637 = vector.broadcast %c10_i32 : i32 to vector<8x1xi32>
    %638 = arith.cmpi eq, %6, %637 : vector<8x1xi32>
    %639 = vector.shape_cast %638 : vector<8x1xi1> to vector<8x1xi1>
    %640 = vector.broadcast %639 : vector<8x1xi1> to vector<8x32xi1>
    %641 = arith.select %640, %636, %578 : vector<8x32xi1>, vector<8x32xf32>
    %c0_106 = arith.constant 0 : index
    %c0_107 = arith.constant 0 : index
    %642 = vector.load %arg10[%c0_106, %c0_107] : memref<8x32xf32, #tpu.memory_space<vmem>>, vector<8x32xf32>
    tpu.vector_store %arg10[%c0_106, %c0_107], %641 {strides = array<i32>} : memref<8x32xf32, #tpu.memory_space<vmem>>, vector<8x32xf32>,
    %c0_108 = arith.constant 0 : index
    %c0_109 = arith.constant 0 : index
    %643 = vector.load %arg8[%c0_108, %c0_109] : memref<32x2xf32, #tpu.memory_space<vmem>>, vector<32x2xf32>
    %cst_110 = arith.constant dense<0.000000e+00> : vector<8x2xf32>
    %644 = tpu.matmul %641, %643, %cst_110 {dimension_numbers = #tpu.dot_dimension_numbers<[1], [0], [0], [1], [0, 0, 1, 1], [], []>} : vector<8x32xf32>, vector<32x2xf32>, vector<8x2xf32> -> vector<8x2xf32>
    %c0_111 = arith.constant 0 : index
    %c0_112 = arith.constant 0 : index
    %645 = vector.load %arg9[%c0_111, %c0_112] : memref<1x2xf32, #tpu.memory_space<vmem>>, vector<1x2xf32>
    %646 = vector.broadcast %645 : vector<1x2xf32> to vector<8x2xf32>
    %647 = arith.addf %644, %646 : vector<8x2xf32>
    %c0_113 = arith.constant 0 : index
    %c0_114 = arith.constant 0 : index
    %648 = vector.load %arg11[%c0_113, %c0_114] : memref<8x2xf32, #tpu.memory_space<vmem>>, vector<8x2xf32>
    tpu.vector_store %arg11[%c0_113, %c0_114], %647 {strides = array<i32>} : memref<8x2xf32, #tpu.memory_space<vmem>>, vector<8x2xf32>,
    return
  }
}

</mosaic_0001>

<bundles_post_ra>
// kernel: lstm_transfer_forward.1
= control target key start
LH: loop header
LB: loop body
LE: loop exit
PB: predicated region body
PF: predicated region fallthrough
CT: control target
= control target key end

     0   :  { %17 = vsyncpa [#allocation3], 0  ;;  %s4915_s0 = inlined_call_operand.hbm [shape: f32[80,16], index: 0, kind: input, shape index: {}]   ;;  %s4916_s1 = inlined_call_operand.vmem [shape: s32[8,1], index: 1, kind: input, shape index: {}]   ;;  %s4917_s2 = inlined_call_operand.hbm [shape: f32[16,128], index: 2, kind: input, shape index: {}]   ;;  %s4918_s3 = inlined_call_operand.vmem [shape: f32[32,128], index: 3, kind: input, shape index: {}]   ;;  %s4919_s4 = inlined_call_operand.vmem [shape: f32[1,128], index: 4, kind: input, shape index: {}]   ;;  %s4920_s5 = inlined_call_operand.vmem [shape: f32[32,128], index: 5, kind: input, shape index: {}]   ;;  %s4921_s6 = inlined_call_operand.hbm [shape: f32[32,128], index: 6, kind: input, shape index: {}]   ;;  %s4922_s7 = inlined_call_operand.vmem [shape: f32[1,128], index: 7, kind: input, shape index: {}]   ;;  %s4923_s8 = inlined_call_operand.vmem [shape: f32[32,2], index: 8, kind: input, shape index: {}]   ;;  %s4924_s9 = inlined_call_operand.hbm [shape: f32[1,2], index: 9, kind: input, shape index: {}]   ;;  %s4925_s10 = inlined_call_operand.hbm [shape: f32[8,32], index: 10, kind: output, shape index: {0}]   ;;  %s4926_s11 = inlined_call_operand.vmem [shape: f32[8,2], index: 11, kind: output, shape index: {1}]  }
   0x1   :  { %18 = vsyncpa [#allocation6], 0 }
   0x2   :  { %19 = vsyncpa [#allocation9], 0 }
   0x3   :  { %20 = vsyncpa [#allocation4], 0  ;;  %s4230_s17 = smov [#allocation5]   ;;  %s4231_s19 = smov [#allocation2]  }
   0x4   :  { %s40_s18 = sshll.u32 %s4230_s17, 4  ;;  %s26_s20 = sshll.u32 %s4231_s19, 4  ;;  %s41_s18 = int_to_ptr.vmem [resolvable:$true] %s40_s18  ;;  %s4303_s20 = int_to_ptr.vmem [resolvable:$true] %s26_s20 }
   0x5   :  { %s4112_s23 = scalar_lea.hbm %s4917_s2, 256 }
   0x6   :  { %p4113_p0 = scmp.ne.s32.totalorder %s4917_s2, %s4112_s23  ;;  %p4116_p1 = scmp.lt.u32.totalorder %s4112_s23, %s4917_s2 }
   0x8   :  { %p4118_p2 = pnand %p4116_p1, %p4113_p0 }
   0xa   :  { %4121 = shalt.err (!%p4118_p2)
}
   0xb   :  { %s4122_s28 = scalar_lea.vmem %s41_s18, 256  ;;  %p4127_p4 = scmp.lt.s32.totalorder %s41_s18, %s41_s18 }
   0xc   :  { %p4123_p3 = scmp.ne.s32.totalorder %s41_s18, %s4122_s28  ;;  %p4128_p5 = scmp.lt.s32.totalorder %s4122_s28, %s4122_s28 }
   0xe   :  { %p4129_p6 = por %p4128_p5, %p4127_p4 }
  0x10   :  { %p4130_p7 = pnand %p4129_p6, %p4123_p3 }
  0x12   :  { %4133 = shalt.err (!%p4130_p7)
}
  0x13   :  { %s4232_s29 = smov 128   ;;  %s4233_s30 = smov 8  }
  0x14   :  { %46 = dma.hbm_to_vmem [thread:$0]  %s4917_s2, 256, %s41_s18, [#allocation6], %s4232_s29, %s4232_s29, %s4233_s30  }
  0x15   :  { %s4134_s16 = scalar_lea.hbm %s4915_s0, 1280 }
  0x16   :  { %p4135_p8 = scmp.ne.s32.totalorder %s4915_s0, %s4134_s16  ;;  %p4138_p9 = scmp.lt.u32.totalorder %s4134_s16, %s4915_s0 }
  0x18   :  { %p4140_p10 = pnand %p4138_p9, %p4135_p8 }
  0x1a   :  { %4143 = shalt.err (!%p4140_p10)
}
  0x1b   :  { %s4144_s23 = scalar_lea.vmem %s4303_s20, 1280  ;;  %p4149_p12 = scmp.lt.s32.totalorder %s4303_s20, %s4303_s20 }
  0x1c   :  { %p4145_p11 = scmp.ne.s32.totalorder %s4303_s20, %s4144_s23  ;;  %p4150_p13 = scmp.lt.s32.totalorder %s4144_s23, %s4144_s23 }
  0x1e   :  { %p4151_p0 = por %p4150_p13, %p4149_p12 }
  0x20   :  { %p4152_p1 = pnand %p4151_p0, %p4145_p11 }
  0x22   :  { %4155 = shalt.err (!%p4152_p1)
}
  0x23   :  { %32 = dma.hbm_to_vmem [thread:$0]  %s4915_s0, 1280, %s4303_s20, [#allocation3], %s4232_s29, %s4232_s29, %s4233_s30  }
  0x24   :  { %s4234_s24 = smov [#allocation7]   ;;  %s4235_s26 = smov [#allocation8]  }
  0x25   :  { %s58_s25 = sshll.u32 %s4234_s24, 4  ;;  %s75_s27 = sshll.u32 %s4235_s26, 4  ;;  %s59_s25 = int_to_ptr.vmem [resolvable:$true] %s58_s25  ;;  %s76_s27 = int_to_ptr.vmem [resolvable:$true] %s75_s27 }
  0x26   :  { %s4156_s13 = scalar_lea.hbm %s4921_s6, 512 }
  0x27   :  { %p4157_p2 = scmp.ne.s32.totalorder %s4921_s6, %s4156_s13  ;;  %p4160_p3 = scmp.lt.u32.totalorder %s4156_s13, %s4921_s6 }
  0x29   :  { %p4162_p4 = pnand %p4160_p3, %p4157_p2 }
  0x2b   :  { %4165 = shalt.err (!%p4162_p4)
}
  0x2c   :  { %s4166_s0 = scalar_lea.vmem %s59_s25, 512  ;;  %p4171_p6 = scmp.lt.s32.totalorder %s59_s25, %s59_s25 }
  0x2d   :  { %p4167_p5 = scmp.ne.s32.totalorder %s59_s25, %s4166_s0  ;;  %p4172_p7 = scmp.lt.s32.totalorder %s4166_s0, %s4166_s0 }
  0x2f   :  { %p4173_p8 = por %p4172_p7, %p4171_p6 }
  0x31   :  { %p4174_p9 = pnand %p4173_p8, %p4167_p5 }
  0x33   :  { %4177 = shalt.err (!%p4174_p9)
}
  0x34   :  { %64 = dma.hbm_to_vmem [thread:$0]  %s4921_s6, 512, %s59_s25, [#allocation6], %s4232_s29, %s4232_s29, %s4233_s30  }
  0x35   :  { %s4178_s23 = scalar_lea.hbm %s4924_s9, 16 }
  0x36   :  { %p4179_p10 = scmp.ne.s32.totalorder %s4924_s9, %s4178_s23  ;;  %p4182_p11 = scmp.lt.u32.totalorder %s4178_s23, %s4924_s9 }
  0x38   :  { %p4184_p12 = pnand %p4182_p11, %p4179_p10 }
  0x3a   :  { %4187 = shalt.err (!%p4184_p12)
}
  0x3b   :  { %s4188_s28 = scalar_lea.vmem %s76_s27, 16  ;;  %s4192_s12 = scalar_lea.vmem %s76_s27, 32 }
  0x3c   :  { %p4189_p13 = scmp.ne.s32.totalorder %s76_s27, %s4188_s28  ;;  %p4193_p0 = scmp.lt.s32.totalorder %s76_s27, %s76_s27 }
  0x3d   :  { %p4194_p1 = scmp.lt.s32.totalorder %s4192_s12, %s4188_s28 }
  0x3f   :  { %p4195_p2 = por %p4194_p1, %p4193_p0 }
  0x41   :  { %p4196_p3 = pnand %p4195_p2, %p4189_p13 }
  0x43   :  { %4199 = shalt.err (!%p4196_p3)
}
  0x44   :  { %78 = dma.hbm_to_vmem [thread:$0]  %s4924_s9, 16, %s76_s27, [#allocation9]  }
  0x45   :  { %4222 = dma.done.wait [#allocation3], 1280  }
  0x46   :  { %4223 = vsyncadd [#allocation3], 4294966016 }
  0x47   :  { %4224 = dma.done.wait [#allocation6], 768  }
  0x48   :  { %4225 = vsyncadd [#allocation6], 4294966528 }
  0x49   :  { %4226 = dma.done.wait [#allocation9], 16  }
  0x4a   :  { %4227 = vsyncadd [#allocation9], 4294967280  ;;  %v4236_v0 = vmov 0.0|0.0   ;;  %vm4237_vm0 = vmmov 0   ;;  %v4238_v1 = vmov 0.0   ;;  %vm110_vm1 = vcmask 130048  }
  0x4b   :  { %3749 = vmatprep.subr.bf16.mxu1 %v4236_v0  ;;  %3412 = vmatprep.mubr.msk.f32.mxu1 %vm4237_vm0, %v4238_v1  ;;  %v101_v2 = vld [vmem:[#allocation5] sm:$0xff]  ;;  %v102_v3 = vld [vmem:[#allocation5 + $0x8] sm:$0xff]  ;;  %v257_v4 = vld [vmem:[%s4918_s3] sm:$0xff]  ;;  %s4239_s0 = smov 64   ;;  %s4240_s20 = smov 32   ;;  %vm270_vm2 = vcmask 261120  }
  0x4c   :  { %v3745_v5 = vpack.c.bf16 %v102_v3, %v101_v2  ;;  %v258_v6 = vld [vmem:[%s4918_s3 + $0x8] sm:$0xff]  ;;  %v91_v7 = vld [vmem:[#allocation2] sm:$0xff]  ;;  %v259_v9 = vld [vmem:[%s4918_s3 + $0x10] sm:$0xff] }
  0x4d   :  { %v4376_v8 = vpack.c.bf16 %v258_v6, %v257_v4  ;;  %3389 = vmatprep.mubr.msk.f32.mxu0 %vm110_vm1, %v91_v7  ;;  %v260_v10 = vld [vmem:[%s4918_s3 + $0x18] sm:$0xff]  ;;  %v92_v11 = vld [vmem:[#allocation2 + $0x8] sm:$0xff]  ;;  %v4399_v13 = vld [vmem:[%s4919_s4] ss:$0 sm:$0xff] }
  0x4e   :  { %3746 = vmatprep.subr.bf16.mxu0 %v3745_v5  ;;  %v4386_v12 = vpack.c.bf16 %v260_v10, %v259_v9  ;;  %v261_v30 = vld [vmem:[%s4920_s5] sm:$0xff]  ;;  %v262_v31 = vld [vmem:[%s4920_s5 + $0x8] sm:$0xff]  ;;  %v93_v32 = vld [vmem:[#allocation2 + $0x10] sm:$0xff] }
  0x4f   :  { %3751 = vmatpush3.bf16.msra.mxu1 %v4376_v8  ;;  %3748 = vmatpush3.bf16.msra.mxu0 %v3745_v5  ;;  %v4415_v33 = vpack.c.bf16 %v262_v31, %v261_v30  ;;  %v94_v34 = vld [vmem:[#allocation2 + $0x18] sm:$0xff]  ;;  %v265_v35 = vld [vmem:[#allocation7] sm:$0xff]  ;;  %v266_v36 = vld [vmem:[#allocation7 + $0x8] sm:$0xff] }
  0x50   :  { %3752 = vmatprep.subr.bf16.mxu1 %v4236_v0  ;;  %3761 = vmatprep.subr.bf16.mxu0 %v4236_v0  ;;  %v4419_v37 = vpack.c.bf16 %v266_v36, %v265_v35  ;;  %v95_v38 = vld [vmem:[#allocation2 + $0x20] sm:$0xff]  ;;  %v267_v39 = vld [vmem:[#allocation7 + $0x10] sm:$0xff]  ;;  %v96_v40 = vld [vmem:[#allocation2 + $0x28] sm:$0xff] }
  0x51   :  { %v268_v41 = vld [vmem:[#allocation7 + $0x18] sm:$0xff]  ;;  %v263_v42 = vld [vmem:[%s4920_s5 + $0x10] sm:$0xff]  ;;  %v99_v48 = vld [vmem:[#allocation2 + $0x40] sm:$0xff] }
  0x52   :  { %3390 = vmatmul.mubr.msk.f32.vlgmr.msra.gmra.mrb[0].mxu0 %vm110_vm1, %v92_v11  ;;  %v4427_v43 = vpack.c.bf16 %v268_v41, %v267_v39  ;;  %v97_v44 = vld [vmem:[#allocation2 + $0x30] sm:$0xff]  ;;  %v264_v45 = vld [vmem:[%s4920_s5 + $0x18] sm:$0xff]  ;;  %v100_v50 = vld [vmem:[#allocation2 + $0x48] sm:$0xff] }
  0x53   :  { %3754 = vmatpush3.bf16.msra.mxu1 %v4386_v12  ;;  %3392 = vmatprep.mubr.msk.f32.mxu0 %vm110_vm1, %v93_v32  ;;  %v4434_v46 = vpack.c.bf16 %v264_v45, %v263_v42  ;;  %v98_v47 = vld [vmem:[#allocation2 + $0x38] sm:$0xff]  ;;  %v4491_v3 = vld [vmem:[%s4922_s7] ss:$0 sm:$0xff] }
  0x54   :  { %3755 = vmatprep.subr.bf16.mxu1 %v4236_v0  ;;  %3763 = vmatpush3.bf16.msra.mxu0 %v4415_v33 }
  0x55   :  { %3764 = vmatprep.subr.bf16.mxu0 %v4236_v0 }
  0x56   :  { %3413 = vmatmul.mubr.f32.vlgmr.msra.gmra.mrb[0].mxu1 %v4238_v1  ;;  %3393 = vmatmul.mubr.msk.f32.gmra.mrb[2].mxu0 %vm110_vm1, %v94_v34 }
  0x57   :  { %3423 = vmatprep.mubr.msk.f32.mxu1 %vm4237_vm0, %v4238_v1  ;;  %3395 = vmatprep.mubr.msk.f32.mxu0 %vm110_vm1, %v95_v38 }
  0x58   :  { %3757 = vmatpush3.bf16.msra.mxu1 %v4419_v37  ;;  %3766 = vmatpush3.bf16.msra.mxu0 %v4434_v46 }
  0x59   :  { %3758 = vmatprep.subr.bf16.mxu1 %v4236_v0  ;;  %3773 = vmatprep.subr.bf16.mxu0 %v4236_v0 }
  0x5a   :  { %3396 = vmatmul.mubr.msk.f32.gmra.mrb[4].mxu0 %vm110_vm1, %v96_v40 }
  0x5b   :  { %3398 = vmatprep.mubr.msk.f32.mxu0 %vm110_vm1, %v97_v44 }
  0x5c   :  { %3760 = vmatpush3.bf16.msra.mxu1 %v4427_v43 }
  0x5d   :  { %3767 = vmatprep.subr.bf16.mxu1 %v4236_v0 }
  0x5e   :  { %3399 = vmatmul.mubr.msk.f32.gmra.mrb[6].mxu0 %vm110_vm1, %v98_v47 }
  0x5f   :  { %3424 = vmatmul.mubr.f32.vlgmr.msra.gmra.mrb[2].mxu1 %v4238_v1  ;;  %3401 = vmatprep.mubr.msk.f32.mxu0 %vm110_vm1, %v99_v48 }
  0x60   :  { %3769 = vmatpush3.bf16.msra.mxu1 %v4376_v8  ;;  %3445 = vmatprep.mubr.msk.f32.mxu1 %vm4237_vm0, %v4238_v1 }
  0x61   :  { %3770 = vmatprep.subr.bf16.mxu1 %v4236_v0 }
  0x62   :  { %3402 = vmatmul.mubr.msk.f32.gmra.mrb[8].mxu0 %vm110_vm1, %v100_v50 }
  0x63   :  { %3434 = vmatprep.mubr.msk.f32.mxu0 %vm4237_vm0, %v4238_v1 }
  0x64   :  { %3772 = vmatpush3.bf16.msra.mxu1 %v4386_v12 }
  0x65   :  { %3779 = vmatprep.subr.bf16.mxu1 %v4236_v0 }
 0x125   :  { %v4401_v14 = vpop.f32.mrb[0].mxu0 }
 0x126   :  { %v207_v15 = vpop.f32.mrb[1].mxu0  ;;  %v213_v2 = vadd.f32 %v4401_v14, %v4399_v13 }
 0x127   :  { %v208_v16 = vadd.f32 %v4399_v13, %v207_v15 }
 0x129   :  { %v340_v17 = vpop.f32.mrb[0].mxu1  ;;  %v4456_v53 = vpop.f32.mrb[2].mxu0 }
 0x12a   :  { %v344_v18 = vadd.f32 %v340_v17, %v208_v16  ;;  %v3414_v19 = vpop.f32.mrb[1].mxu1  ;;  %v4458_v54 = vpop.f32.mrb[3].mxu0 }
 0x12c   :  { %3950 = vtanh.f32 %v344_v18  ;;  %v3167_v21 = vmul.f32 -1.442695, %v344_v18 }
 0x12d   :  { %v4460_v55 = vpop.f32.mrb[4].mxu0 }
 0x12e   :  { %3952 = vpow2.f32 %v3167_v21  ;;  %v4462_v56 = vpop.f32.mrb[5].mxu0 }
 0x131   :  { %v4464_v57 = vpop.f32.mrb[6].mxu0 }
 0x132   :  { %v4466_v58 = vpop.f32.mrb[7].mxu0  ;;  %v435_v59 = vpop.f32.mrb[2].mxu1 }
 0x133   :  { %v3425_v60 = vpop.f32.mrb[3].mxu1 }
 0x135   :  { %v4468_v61 = vpop.f32.mrb[8].mxu0 }
 0x136   :  { %v3951_v20 = vpop.eup %3950  ;;  %v4470_v62 = vpop.f32.mrb[9].mxu0 }
 0x137   :  { %354 = vrot.lane.b32.xlu0 %v3951_v20, %s4239_s0 }
 0x138   :  { %v3953_v22 = vpop.eup %3952 }
 0x139   :  { %v348_v23 = vadd.f32 1.0, %v3953_v22 }
 0x13b   :  { %3954 = vrcp.f32 %v348_v23 }
 0x145   :  { %v3955_v24 = vpop.eup %3954 }
 0x146   :  { %v352_v27 = vmul.f32 0.0, %v3955_v24 }
 0x1a9   :  { %v355_v25 = vpop.permute.xlu0 %354 }
 0x1aa   :  { %v357_v26 = vmul.f32 %v3955_v24, %v355_v25 }
 0x1ac   :  { %359 = vrot.lane.b32.xlu0 %v357_v26, %s4240_s20 }
 0x21e   :  { %v360_v28 = vpop.permute.xlu0 %359 }
 0x21f   :  { %v4406_v29 = vadd.f32 %v360_v28, %v352_v27 }
 0x221   :  { %3956 = vtanh.f32 %v4406_v29 }
 0x22b   :  { %v3957_v49 = vpop.eup %3956 }
 0x22c   :  { %365 = vrot.lane.b32.xlu1 %v3957_v49, %s4239_s0 }
 0x29e   :  { %v366_v51 = vpop.permute.xlu1 %365 }
 0x29f   :  { %v368_v52 = vmul.f32 %v3955_v24, %v366_v51 }
 0x2a1   :  { %440 = vrot.lane.b32.xlu1 %v368_v52, %s4240_s20  ;;  %v218_v52 = vadd.f32 %v4399_v13, %v4458_v54 }
 0x313   :  { %v441_v63 = vpop.permute.xlu1 %440 }
 0x314   :  { %3435 = vmatmul.mubr.msk.f32.vlgmr.msra.gmra.mrb[10].mxu0 %vm270_vm2, %v441_v63  ;;  %3446 = vmatmul.mubr.msk.f32.vlgmr.msra.gmra.mrb[4].mxu1 %vm270_vm2, %v441_v63 }
 0x315   :  { %3781 = vmatpush3.bf16.msra.mxu1 %v4415_v33  ;;  %3775 = vmatpush3.bf16.msra.mxu0 %v4419_v37 }
 0x316   :  { %3782 = vmatprep.subr.bf16.mxu1 %v4236_v0  ;;  %3776 = vmatprep.subr.bf16.mxu0 %v4236_v0 }
 0x317   :  { %3467 = vmatprep.mubr.msk.f32.mxu1 %vm4237_vm0, %v4238_v1  ;;  %3456 = vmatprep.mubr.msk.f32.mxu0 %vm4237_vm0, %v4238_v1 }
 0x319   :  { %3784 = vmatpush3.bf16.msra.mxu1 %v4434_v46  ;;  %3778 = vmatpush3.bf16.msra.mxu0 %v4427_v43 }
 0x31a   :  { %3785 = vmatprep.subr.bf16.mxu0 %v4236_v0  ;;  %3791 = vmatprep.subr.bf16.mxu1 %v4236_v0 }
 0x3e7   :  { %v510_v4 = vpop.f32.mrb[10].mxu0  ;;  %v618_v5 = vpop.f32.mrb[4].mxu1 }
 0x3e8   :  { %v511_v6 = vadd.f32 %v510_v4, %v435_v59  ;;  %v622_v7 = vadd.f32 %v618_v5, %v213_v2  ;;  %v3436_v9 = vpop.f32.mrb[11].mxu0  ;;  %v3447_v10 = vpop.f32.mrb[5].mxu1 }
 0x3ea   :  { %v520_v11 = vadd.f32 %v4491_v3, %v511_v6  ;;  %3958 = vtanh.f32 %v622_v7  ;;  %v3172_v14 = vmul.f32 -1.442695, %v622_v7 }
 0x3ec   :  { %3960 = vtanh.f32 %v520_v11  ;;  %v3170_v17 = vmul.f32 -1.442695, %v520_v11 }
 0x3ed   :  { %3962 = vpow2.f32 %v3172_v14 }
 0x3ee   :  { %3964 = vpow2.f32 %v3170_v17 }
 0x3f4   :  { %v3959_v15 = vpop.eup %3958 }
 0x3f5   :  { %632 = vrot.lane.b32.xlu1 %v3959_v15, %s4239_s0 }
 0x3f6   :  { %v3961_v16 = vpop.eup %3960 }
 0x3f7   :  { %530 = vrot.lane.b32.xlu0 %v3961_v16, %s4239_s0  ;;  %v3963_v18 = vpop.eup %3962 }
 0x3f8   :  { %v3965_v19 = vpop.eup %3964  ;;  %v626_v20 = vadd.f32 1.0, %v3963_v18 }
 0x3f9   :  { %v524_v21 = vadd.f32 1.0, %v3965_v19 }
 0x3fa   :  { %3966 = vrcp.f32 %v626_v20 }
 0x3fb   :  { %3968 = vrcp.f32 %v524_v21 }
 0x404   :  { %v3967_v22 = vpop.eup %3966 }
 0x405   :  { %v3969_v25 = vpop.eup %3968  ;;  %v630_v28 = vmul.f32 %v3967_v22, %v4406_v29 }
 0x406   :  { %v528_v32 = vmul.f32 0.0, %v3969_v25 }
 0x467   :  { %v633_v23 = vpop.permute.xlu1 %632 }
 0x468   :  { %v635_v24 = vmul.f32 %v3967_v22, %v633_v23 }
 0x469   :  { %v531_v26 = vpop.permute.xlu0 %530 }
 0x46a   :  { %v533_v27 = vmul.f32 %v3969_v25, %v531_v26  ;;  %637 = vrot.lane.b32.xlu1 %v635_v24, %s4240_s20 }
 0x46c   :  { %535 = vrot.lane.b32.xlu0 %v533_v27, %s4240_s20 }
 0x4dc   :  { %v638_v30 = vpop.permute.xlu1 %637 }
 0x4dd   :  { %v4499_v31 = vadd.f32 %v638_v30, %v630_v28 }
 0x4de   :  { %v536_v34 = vpop.permute.xlu0 %535 }
 0x4df   :  { %3970 = vtanh.f32 %v4499_v31  ;;  %v4502_v35 = vadd.f32 %v536_v34, %v528_v32 }
 0x4e1   :  { %3972 = vtanh.f32 %v4502_v35 }
 0x4e9   :  { %v3971_v36 = vpop.eup %3970 }
 0x4ea   :  { %643 = vrot.lane.b32.xlu1 %v3971_v36, %s4239_s0 }
 0x4eb   :  { %v3973_v38 = vpop.eup %3972 }
 0x4ec   :  { %541 = vrot.lane.b32.xlu0 %v3973_v38, %s4239_s0 }
 0x55c   :  { %v644_v39 = vpop.permute.xlu1 %643 }
 0x55d   :  { %v646_v40 = vmul.f32 %v3967_v22, %v644_v39  ;;  %v223_v39 = vadd.f32 %v4456_v53, %v4399_v13 }
 0x55e   :  { %v542_v29 = vpop.permute.xlu0 %541 }
 0x55f   :  { %v4507_v41 = vmul.f32 %v3969_v25, %v542_v29  ;;  %723 = vrot.lane.b32.xlu1 %v646_v40, %s4240_s20 }
 0x561   :  { %648 = vrot.lane.b32.xlu0 %v4507_v41, %s4240_s20 }
 0x5d1   :  { %v724_v42 = vpop.permute.xlu1 %723 }
 0x5d2   :  { %3468 = vmatmul.mubr.msk.f32.vlgmr.msra.gmra.mrb[6].mxu1 %vm270_vm2, %v724_v42 }
 0x5d3   :  { %v649_v44 = vpop.permute.xlu0 %648  ;;  %3793 = vmatpush3.bf16.msra.mxu1 %v4419_v37  ;;  %3489 = vmatprep.mubr.msk.f32.mxu1 %vm4237_vm0, %v4238_v1 }
 0x5d4   :  { %3457 = vmatmul.mubr.msk.f32.vlgmr.msra.gmra.mrb[12].mxu0 %vm270_vm2, %v649_v44  ;;  %3794 = vmatprep.subr.bf16.mxu1 %v4236_v0 }
 0x5d5   :  { %3787 = vmatpush3.bf16.msra.mxu0 %v4376_v8  ;;  %3478 = vmatprep.mubr.msk.f32.mxu0 %vm4237_vm0, %v4238_v1 }
 0x5d6   :  { %3788 = vmatprep.subr.bf16.mxu0 %v4236_v0 }
 0x5d7   :  { %3796 = vmatpush3.bf16.msra.mxu1 %v4427_v43 }
 0x5d8   :  { %3803 = vmatprep.subr.bf16.mxu1 %v4236_v0 }
 0x5d9   :  { %3790 = vmatpush3.bf16.msra.mxu0 %v4386_v12 }
 0x5da   :  { %3797 = vmatprep.subr.bf16.mxu0 %v4236_v0 }
 0x5dc   :  { %3479 = vmatmul.mubr.msk.f32.vlgmr.msra.gmra.mrb[14].mxu0 %vm270_vm2, %v724_v42 }
 0x5dd   :  { %3799 = vmatpush3.bf16.msra.mxu0 %v4415_v33  ;;  %3500 = vmatprep.mubr.msk.f32.mxu0 %vm4237_vm0, %v4238_v1 }
 0x5de   :  { %3800 = vmatprep.subr.bf16.mxu0 %v4236_v0 }
 0x5e1   :  { %3802 = vmatpush3.bf16.msra.mxu0 %v4434_v46 }
 0x5e2   :  { %3809 = vmatprep.subr.bf16.mxu0 %v4236_v0 }
 0x6a5   :  { %v793_v45 = vpop.f32.mrb[6].mxu1 }
 0x6a6   :  { %v3469_v47 = vpop.f32.mrb[7].mxu1 }
 0x6a7   :  { %v718_v48 = vpop.f32.mrb[12].mxu0 }
 0x6a8   :  { %v794_v49 = vadd.f32 %v793_v45, %v718_v48  ;;  %v3458_v50 = vpop.f32.mrb[13].mxu0 }
 0x6aa   :  { %v797_v51 = vadd.f32 %v4491_v3, %v794_v49 }
 0x6ac   :  { %3974 = vtanh.f32 %v797_v51  ;;  %v3175_v5 = vmul.f32 -1.442695, %v797_v51 }
 0x6af   :  { %v895_v59 = vpop.f32.mrb[14].mxu0 }
 0x6b0   :  { %v899_v60 = vadd.f32 %v895_v59, %v218_v52  ;;  %v3480_v63 = vpop.f32.mrb[15].mxu0 }
 0x6b2   :  { %3976 = vtanh.f32 %v899_v60  ;;  %v3177_v6 = vmul.f32 -1.442695, %v899_v60 }
 0x6b3   :  { %3978 = vpow2.f32 %v3175_v5 }
 0x6b4   :  { %3980 = vpow2.f32 %v3177_v6 }
 0x6b6   :  { %v3975_v2 = vpop.eup %3974 }
 0x6b7   :  { %807 = vrot.lane.b32.xlu0 %v3975_v2, %s4239_s0 }
 0x6bc   :  { %v3977_v4 = vpop.eup %3976 }
 0x6bd   :  { %909 = vrot.lane.b32.xlu1 %v3977_v4, %s4239_s0  ;;  %v3979_v7 = vpop.eup %3978 }
 0x6be   :  { %v801_v9 = vadd.f32 1.0, %v3979_v7  ;;  %v3981_v10 = vpop.eup %3980 }
 0x6bf   :  { %v903_v11 = vadd.f32 1.0, %v3981_v10 }
 0x6c0   :  { %3982 = vrcp.f32 %v801_v9 }
 0x6c1   :  { %3984 = vrcp.f32 %v903_v11 }
 0x6ca   :  { %v3983_v54 = vpop.eup %3982 }
 0x6cb   :  { %v3985_v14 = vpop.eup %3984  ;;  %v805_v19 = vmul.f32 %v3983_v54, %v4502_v35 }
 0x6cc   :  { %v907_v22 = vmul.f32 %v3985_v14, %v4499_v31 }
 0x729   :  { %v808_v15 = vpop.permute.xlu0 %807 }
 0x72a   :  { %v810_v16 = vmul.f32 %v3983_v54, %v808_v15 }
 0x72c   :  { %812 = vrot.lane.b32.xlu0 %v810_v16, %s4240_s20 }
 0x72f   :  { %v910_v17 = vpop.permute.xlu1 %909 }
 0x730   :  { %v912_v18 = vmul.f32 %v3985_v14, %v910_v17 }
 0x732   :  { %914 = vrot.lane.b32.xlu1 %v912_v18, %s4240_s20 }
 0x79e   :  { %v813_v20 = vpop.permute.xlu0 %812 }
 0x79f   :  { %v4541_v21 = vadd.f32 %v813_v20, %v805_v19 }
 0x7a1   :  { %3986 = vtanh.f32 %v4541_v21 }
 0x7a4   :  { %v915_v23 = vpop.permute.xlu1 %914 }
 0x7a5   :  { %v4545_v24 = vadd.f32 %v915_v23, %v907_v22 }
 0x7a7   :  { %3988 = vtanh.f32 %v4545_v24 }
 0x7ab   :  { %v3987_v25 = vpop.eup %3986 }
 0x7ac   :  { %818 = vrot.lane.b32.xlu0 %v3987_v25, %s4239_s0 }
 0x7b1   :  { %v3989_v26 = vpop.eup %3988 }
 0x7b2   :  { %920 = vrot.lane.b32.xlu1 %v3989_v26, %s4239_s0 }
 0x81e   :  { %v819_v27 = vpop.permute.xlu0 %818 }
 0x81f   :  { %v4550_v28 = vmul.f32 %v3983_v54, %v819_v27 }
 0x821   :  { %925 = vrot.lane.b32.xlu0 %v4550_v28, %s4240_s20 }
 0x824   :  { %v921_v30 = vpop.permute.xlu1 %920 }
 0x825   :  { %v923_v32 = vmul.f32 %v3985_v14, %v921_v30 }
 0x827   :  { %1000 = vrot.lane.b32.xlu1 %v923_v32, %s4240_s20 }
 0x893   :  { %v926_v31 = vpop.permute.xlu0 %925 }
 0x894   :  { %3490 = vmatmul.mubr.msk.f32.vlgmr.msra.gmra.mrb[8].mxu1 %vm270_vm2, %v926_v31  ;;  %v228_v31 = vadd.f32 %v4399_v13, %v4462_v56 }
 0x895   :  { %3805 = vmatpush3.bf16.msra.mxu1 %v4376_v8  ;;  %3511 = vmatprep.mubr.msk.f32.mxu1 %vm4237_vm0, %v4238_v1 }
 0x896   :  { %3806 = vmatprep.subr.bf16.mxu1 %v4236_v0 }
 0x899   :  { %3808 = vmatpush3.bf16.msra.mxu1 %v4386_v12  ;;  %v1001_v34 = vpop.permute.xlu1 %1000 }
 0x89a   :  { %3501 = vmatmul.mubr.msk.f32.vlgmr.msra.gmra.mrb[16].mxu0 %vm270_vm2, %v1001_v34  ;;  %3815 = vmatprep.subr.bf16.mxu1 %v4236_v0 }
 0x89b   :  { %3811 = vmatpush3.bf16.msra.mxu0 %v4419_v37  ;;  %3522 = vmatprep.mubr.msk.f32.mxu0 %vm4237_vm0, %v4238_v1 }
 0x89c   :  { %3512 = vmatmul.mubr.msk.f32.vlgmr.msra.gmra.mrb[10].mxu1 %vm270_vm2, %v1001_v34  ;;  %3812 = vmatprep.subr.bf16.mxu0 %v4236_v0 }
 0x89d   :  { %3817 = vmatpush3.bf16.msra.mxu1 %v4415_v33  ;;  %3533 = vmatprep.mubr.msk.f32.mxu1 %vm4237_vm0, %v4238_v1 }
 0x89e   :  { %3818 = vmatprep.subr.bf16.mxu1 %v4236_v0 }
 0x89f   :  { %3814 = vmatpush3.bf16.msra.mxu0 %v4427_v43 }
 0x8a0   :  { %3821 = vmatprep.subr.bf16.mxu0 %v4236_v0 }
 0x8a1   :  { %3820 = vmatpush3.bf16.msra.mxu1 %v4434_v46 }
 0x8a2   :  { %3827 = vmatprep.subr.bf16.mxu1 %v4236_v0 }
 0x967   :  { %v995_v35 = vpop.f32.mrb[8].mxu1 }
 0x968   :  { %v3491_v36 = vpop.f32.mrb[9].mxu1 }
 0x96d   :  { %v1070_v38 = vpop.f32.mrb[16].mxu0 }
 0x96e   :  { %v1071_v40 = vadd.f32 %v1070_v38, %v995_v35  ;;  %v3502_v29 = vpop.f32.mrb[17].mxu0 }
 0x96f   :  { %v1172_v42 = vpop.f32.mrb[10].mxu1 }
 0x970   :  { %v1074_v44 = vadd.f32 %v4491_v3, %v1071_v40  ;;  %v1176_v45 = vadd.f32 %v1172_v42, %v223_v39  ;;  %v3513_v47 = vpop.f32.mrb[11].mxu1 }
 0x972   :  { %3990 = vtanh.f32 %v1074_v44  ;;  %v3180_v50 = vmul.f32 -1.442695, %v1074_v44  ;;  %v3182_v51 = vmul.f32 -1.442695, %v1176_v45 }
 0x973   :  { %3992 = vtanh.f32 %v1176_v45 }
 0x974   :  { %3994 = vpow2.f32 %v3180_v50 }
 0x975   :  { %3996 = vpow2.f32 %v3182_v51 }
 0x97c   :  { %v3991_v48 = vpop.eup %3990 }
 0x97d   :  { %v3993_v49 = vpop.eup %3992  ;;  %1084 = vrot.lane.b32.xlu0 %v3991_v48, %s4239_s0 }
 0x97e   :  { %1186 = vrot.lane.b32.xlu1 %v3993_v49, %s4239_s0  ;;  %v3995_v53 = vpop.eup %3994 }
 0x97f   :  { %v3997_v52 = vpop.eup %3996  ;;  %v1078_v59 = vadd.f32 1.0, %v3995_v53 }
 0x980   :  { %v1180_v60 = vadd.f32 1.0, %v3997_v52 }
 0x981   :  { %3998 = vrcp.f32 %v1078_v59 }
 0x982   :  { %4000 = vrcp.f32 %v1180_v60 }
 0x98b   :  { %v3999_v63 = vpop.eup %3998 }
 0x98c   :  { %v4001_v4 = vpop.eup %4000  ;;  %v1082_v9 = vmul.f32 %v3999_v63, %v4541_v21 }
 0x98d   :  { %v1184_v10 = vmul.f32 %v4001_v4, %v4545_v24 }
 0x9ef   :  { %v1085_v2 = vpop.permute.xlu0 %1084 }
 0x9f0   :  { %v1187_v5 = vpop.permute.xlu1 %1186  ;;  %v1087_v6 = vmul.f32 %v3999_v63, %v1085_v2 }
 0x9f1   :  { %v1189_v7 = vmul.f32 %v4001_v4, %v1187_v5 }
 0x9f2   :  { %1089 = vrot.lane.b32.xlu0 %v1087_v6, %s4240_s20 }
 0x9f3   :  { %1191 = vrot.lane.b32.xlu1 %v1189_v7, %s4240_s20 }
 0xa64   :  { %v1090_v11 = vpop.permute.xlu0 %1089 }
 0xa65   :  { %v1192_v54 = vpop.permute.xlu1 %1191  ;;  %v4585_v15 = vadd.f32 %v1090_v11, %v1082_v9 }
 0xa66   :  { %v4587_v16 = vadd.f32 %v1192_v54, %v1184_v10 }
 0xa67   :  { %4002 = vtanh.f32 %v4585_v15 }
 0xa68   :  { %4004 = vtanh.f32 %v4587_v16 }
 0xa71   :  { %v4003_v14 = vpop.eup %4002 }
 0xa72   :  { %v4005_v17 = vpop.eup %4004  ;;  %1095 = vrot.lane.b32.xlu0 %v4003_v14, %s4239_s0 }
 0xa73   :  { %1197 = vrot.lane.b32.xlu1 %v4005_v17, %s4239_s0 }
 0xae4   :  { %v1096_v18 = vpop.permute.xlu0 %1095 }
 0xae5   :  { %v1198_v19 = vpop.permute.xlu1 %1197  ;;  %v4593_v20 = vmul.f32 %v3999_v63, %v1096_v18 }
 0xae6   :  { %v1200_v21 = vmul.f32 %v4001_v4, %v1198_v19 }
 0xae7   :  { %1202 = vrot.lane.b32.xlu0 %v4593_v20, %s4240_s20 }
 0xae8   :  { %1277 = vrot.lane.b32.xlu1 %v1200_v21, %s4240_s20  ;;  %v233_v21 = vadd.f32 %v4460_v55, %v4399_v13 }
 0xb59   :  { %v1203_v22 = vpop.permute.xlu0 %1202 }
 0xb5a   :  { %v1278_v23 = vpop.permute.xlu1 %1277  ;;  %3523 = vmatmul.mubr.msk.f32.vlgmr.msra.gmra.mrb[18].mxu0 %vm270_vm2, %v1203_v22 }
 0xb5b   :  { %3534 = vmatmul.mubr.msk.f32.vlgmr.msra.gmra.mrb[12].mxu1 %vm270_vm2, %v1278_v23  ;;  %3823 = vmatpush3.bf16.msra.mxu0 %v4376_v8 }
 0xb5c   :  { %3824 = vmatprep.subr.bf16.mxu0 %v4236_v0  ;;  %3544 = vmatprep.mubr.msk.f32.mxu0 %vm4237_vm0, %v4238_v1 }
 0xb5d   :  { %3829 = vmatpush3.bf16.msra.mxu1 %v4419_v37  ;;  %3555 = vmatprep.mubr.msk.f32.mxu1 %vm4237_vm0, %v4238_v1 }
 0xb5e   :  { %3830 = vmatprep.subr.bf16.mxu1 %v4236_v0 }
 0xb5f   :  { %3826 = vmatpush3.bf16.msra.mxu0 %v4386_v12 }
 0xb60   :  { %3833 = vmatprep.subr.bf16.mxu0 %v4236_v0 }
 0xb61   :  { %3832 = vmatpush3.bf16.msra.mxu1 %v4427_v43 }
 0xb62   :  { %3545 = vmatmul.mubr.msk.f32.vlgmr.msra.gmra.mrb[20].mxu0 %vm270_vm2, %v1278_v23  ;;  %3839 = vmatprep.subr.bf16.mxu1 %v4236_v0 }
 0xb63   :  { %3835 = vmatpush3.bf16.msra.mxu0 %v4415_v33  ;;  %3566 = vmatprep.mubr.msk.f32.mxu0 %vm4237_vm0, %v4238_v1 }
 0xb64   :  { %3836 = vmatprep.subr.bf16.mxu0 %v4236_v0 }
 0xb67   :  { %3838 = vmatpush3.bf16.msra.mxu0 %v4434_v46 }
 0xb68   :  { %3845 = vmatprep.subr.bf16.mxu0 %v4236_v0 }
 0xc2d   :  { %v1272_v24 = vpop.f32.mrb[18].mxu0 }
 0xc2e   :  { %v1347_v25 = vpop.f32.mrb[12].mxu1  ;;  %v3524_v26 = vpop.f32.mrb[19].mxu0 }
 0xc2f   :  { %v1348_v27 = vadd.f32 %v1347_v25, %v1272_v24  ;;  %v3535_v30 = vpop.f32.mrb[13].mxu1 }
 0xc31   :  { %v1351_v32 = vadd.f32 %v4491_v3, %v1348_v27 }
 0xc33   :  { %4006 = vtanh.f32 %v1351_v32  ;;  %v3185_v40 = vmul.f32 -1.442695, %v1351_v32 }
 0xc35   :  { %v1449_v34 = vpop.f32.mrb[20].mxu0 }
 0xc36   :  { %v1453_v35 = vadd.f32 %v1449_v34, %v228_v31  ;;  %v3546_v36 = vpop.f32.mrb[21].mxu0 }
 0xc38   :  { %4008 = vtanh.f32 %v1453_v35  ;;  %v3187_v29 = vmul.f32 -1.442695, %v1453_v35 }
 0xc39   :  { %4010 = vpow2.f32 %v3185_v40 }
 0xc3a   :  { %4012 = vpow2.f32 %v3187_v29 }
 0xc3d   :  { %v4007_v38 = vpop.eup %4006 }
 0xc3e   :  { %1361 = vrot.lane.b32.xlu0 %v4007_v38, %s4239_s0 }
 0xc42   :  { %v4009_v39 = vpop.eup %4008 }
 0xc43   :  { %1463 = vrot.lane.b32.xlu1 %v4009_v39, %s4239_s0  ;;  %v4011_v42 = vpop.eup %4010 }
 0xc44   :  { %v1355_v44 = vadd.f32 1.0, %v4011_v42  ;;  %v4013_v45 = vpop.eup %4012 }
 0xc45   :  { %v1457_v47 = vadd.f32 1.0, %v4013_v45 }
 0xc46   :  { %4014 = vrcp.f32 %v1355_v44 }
 0xc47   :  { %4016 = vrcp.f32 %v1457_v47 }
 0xc50   :  { %v4015_v56 = vpop.eup %4014 }
 0xc51   :  { %v4017_v50 = vpop.eup %4016  ;;  %v1359_v52 = vmul.f32 %v4015_v56, %v4585_v15 }
 0xc52   :  { %v1461_v63 = vmul.f32 %v4017_v50, %v4587_v16 }
 0xcb0   :  { %v1362_v48 = vpop.permute.xlu0 %1361 }
 0xcb1   :  { %v1364_v49 = vmul.f32 %v4015_v56, %v1362_v48 }
 0xcb3   :  { %1366 = vrot.lane.b32.xlu0 %v1364_v49, %s4240_s20 }
 0xcb5   :  { %v1464_v51 = vpop.permute.xlu1 %1463 }
 0xcb6   :  { %v1466_v53 = vmul.f32 %v4017_v50, %v1464_v51 }
 0xcb8   :  { %1468 = vrot.lane.b32.xlu1 %v1466_v53, %s4240_s20 }
 0xd25   :  { %v1367_v59 = vpop.permute.xlu0 %1366 }
 0xd26   :  { %v4627_v60 = vadd.f32 %v1367_v59, %v1359_v52 }
 0xd28   :  { %4018 = vtanh.f32 %v4627_v60 }
 0xd2a   :  { %v1469_v2 = vpop.permute.xlu1 %1468 }
 0xd2b   :  { %v4631_v4 = vadd.f32 %v1469_v2, %v1461_v63 }
 0xd2d   :  { %4020 = vtanh.f32 %v4631_v4 }
 0xd32   :  { %v4019_v5 = vpop.eup %4018 }
 0xd33   :  { %1372 = vrot.lane.b32.xlu0 %v4019_v5, %s4239_s0 }
 0xd37   :  { %v4021_v6 = vpop.eup %4020 }
 0xd38   :  { %1474 = vrot.lane.b32.xlu1 %v4021_v6, %s4239_s0 }
 0xda5   :  { %v1373_v7 = vpop.permute.xlu0 %1372 }
 0xda6   :  { %v4636_v9 = vmul.f32 %v4015_v56, %v1373_v7 }
 0xda8   :  { %1479 = vrot.lane.b32.xlu0 %v4636_v9, %s4240_s20 }
 0xdaa   :  { %v1475_v10 = vpop.permute.xlu1 %1474 }
 0xdab   :  { %v1477_v11 = vmul.f32 %v4017_v50, %v1475_v10 }
 0xdad   :  { %1554 = vrot.lane.b32.xlu1 %v1477_v11, %s4240_s20 }
 0xe1a   :  { %v1480_v54 = vpop.permute.xlu0 %1479 }
 0xe1b   :  { %3556 = vmatmul.mubr.msk.f32.vlgmr.msra.gmra.mrb[14].mxu1 %vm270_vm2, %v1480_v54  ;;  %v238_v54 = vadd.f32 %v4399_v13, %v4466_v58 }
 0xe1c   :  { %3841 = vmatpush3.bf16.msra.mxu1 %v4376_v8  ;;  %3577 = vmatprep.mubr.msk.f32.mxu1 %vm4237_vm0, %v4238_v1 }
 0xe1d   :  { %3842 = vmatprep.subr.bf16.mxu1 %v4236_v0 }
 0xe1f   :  { %v1555_v15 = vpop.permute.xlu1 %1554 }
 0xe20   :  { %3844 = vmatpush3.bf16.msra.mxu1 %v4386_v12  ;;  %3567 = vmatmul.mubr.msk.f32.vlgmr.msra.gmra.mrb[22].mxu0 %vm270_vm2, %v1555_v15 }
 0xe21   :  { %3847 = vmatpush3.bf16.msra.mxu0 %v4419_v37  ;;  %3851 = vmatprep.subr.bf16.mxu1 %v4236_v0 }
 0xe22   :  { %3848 = vmatprep.subr.bf16.mxu0 %v4236_v0  ;;  %3588 = vmatprep.mubr.msk.f32.mxu0 %vm4237_vm0, %v4238_v1 }
 0xe23   :  { %3578 = vmatmul.mubr.msk.f32.vlgmr.msra.gmra.mrb[16].mxu1 %vm270_vm2, %v1555_v15 }
 0xe24   :  { %3853 = vmatpush3.bf16.msra.mxu1 %v4415_v33  ;;  %3599 = vmatprep.mubr.msk.f32.mxu1 %vm4237_vm0, %v4238_v1 }
 0xe25   :  { %3850 = vmatpush3.bf16.msra.mxu0 %v4427_v43  ;;  %3854 = vmatprep.subr.bf16.mxu1 %v4236_v0 }
 0xe26   :  { %3857 = vmatprep.subr.bf16.mxu0 %v4236_v0 }
 0xe28   :  { %3856 = vmatpush3.bf16.msra.mxu1 %v4434_v46 }
 0xe29   :  { %3863 = vmatprep.subr.bf16.mxu1 %v4236_v0 }
 0xeee   :  { %v1549_v16 = vpop.f32.mrb[14].mxu1 }
 0xeef   :  { %v3557_v14 = vpop.f32.mrb[15].mxu1 }
 0xef3   :  { %v1624_v17 = vpop.f32.mrb[22].mxu0 }
 0xef4   :  { %v1625_v18 = vadd.f32 %v1624_v17, %v1549_v16  ;;  %v3568_v19 = vpop.f32.mrb[23].mxu0 }
 0xef6   :  { %v1628_v22 = vadd.f32 %v4491_v3, %v1625_v18  ;;  %v1726_v23 = vpop.f32.mrb[16].mxu1 }
 0xef7   :  { %v1730_v24 = vadd.f32 %v1726_v23, %v233_v21  ;;  %v3579_v25 = vpop.f32.mrb[17].mxu1 }
 0xef8   :  { %4022 = vtanh.f32 %v1628_v22  ;;  %v3190_v30 = vmul.f32 -1.442695, %v1628_v22 }
 0xef9   :  { %4024 = vtanh.f32 %v1730_v24  ;;  %v3192_v32 = vmul.f32 -1.442695, %v1730_v24 }
 0xefa   :  { %4026 = vpow2.f32 %v3190_v30 }
 0xefb   :  { %4028 = vpow2.f32 %v3192_v32 }
 0xf02   :  { %v4023_v26 = vpop.eup %4022 }
 0xf03   :  { %v4025_v27 = vpop.eup %4024  ;;  %1638 = vrot.lane.b32.xlu0 %v4023_v26, %s4239_s0 }
 0xf04   :  { %1740 = vrot.lane.b32.xlu1 %v4025_v27, %s4239_s0  ;;  %v4027_v31 = vpop.eup %4026 }
 0xf05   :  { %v4029_v34 = vpop.eup %4028  ;;  %v1632_v55 = vadd.f32 1.0, %v4027_v31 }
 0xf06   :  { %v1734_v35 = vadd.f32 1.0, %v4029_v34 }
 0xf07   :  { %4030 = vrcp.f32 %v1632_v55 }
 0xf08   :  { %4032 = vrcp.f32 %v1734_v35 }
 0xf11   :  { %v4031_v36 = vpop.eup %4030 }
 0xf12   :  { %v4033_v39 = vpop.eup %4032  ;;  %v1636_v44 = vmul.f32 %v4031_v36, %v4627_v60 }
 0xf13   :  { %v1738_v45 = vmul.f32 %v4033_v39, %v4631_v4 }
 0xf75   :  { %v1639_v38 = vpop.permute.xlu0 %1638 }
 0xf76   :  { %v1741_v40 = vpop.permute.xlu1 %1740  ;;  %v1641_v29 = vmul.f32 %v4031_v36, %v1639_v38 }
 0xf77   :  { %v1743_v42 = vmul.f32 %v4033_v39, %v1741_v40 }
 0xf78   :  { %1643 = vrot.lane.b32.xlu0 %v1641_v29, %s4240_s20 }
 0xf79   :  { %1745 = vrot.lane.b32.xlu1 %v1743_v42, %s4240_s20 }
 0xfea   :  { %v1644_v47 = vpop.permute.xlu0 %1643 }
 0xfeb   :  { %v1746_v56 = vpop.permute.xlu1 %1745  ;;  %v4671_v48 = vadd.f32 %v1644_v47, %v1636_v44 }
 0xfec   :  { %v4673_v49 = vadd.f32 %v1746_v56, %v1738_v45 }
 0xfed   :  { %4034 = vtanh.f32 %v4671_v48 }
 0xfee   :  { %4036 = vtanh.f32 %v4673_v49 }
 0xff7   :  { %v4035_v50 = vpop.eup %4034 }
 0xff8   :  { %v4037_v51 = vpop.eup %4036  ;;  %1649 = vrot.lane.b32.xlu0 %v4035_v50, %s4239_s0 }
 0xff9   :  { %1751 = vrot.lane.b32.xlu1 %v4037_v51, %s4239_s0 }
0x106a   :  { %v1650_v53 = vpop.permute.xlu0 %1649 }
0x106b   :  { %v1752_v52 = vpop.permute.xlu1 %1751  ;;  %v4679_v59 = vmul.f32 %v4031_v36, %v1650_v53 }
0x106c   :  { %v1754_v60 = vmul.f32 %v4033_v39, %v1752_v52  ;;  %v4751_v52 = vld [vmem:[%s4919_s4] ss:$0 sm:$0xff] }
0x106d   :  { %1756 = vrot.lane.b32.xlu0 %v4679_v59, %s4240_s20 }
0x106e   :  { %1831 = vrot.lane.b32.xlu1 %v1754_v60, %s4240_s20  ;;  %v243_v60 = vadd.f32 %v4751_v52, %v4464_v57 }
0x10df   :  { %v1757_v63 = vpop.permute.xlu0 %1756 }
0x10e0   :  { %v1832_v2 = vpop.permute.xlu1 %1831  ;;  %3589 = vmatmul.mubr.msk.f32.vlgmr.msra.gmra.mrb[24].mxu0 %vm270_vm2, %v1757_v63 }
0x10e1   :  { %3600 = vmatmul.mubr.msk.f32.vlgmr.msra.gmra.mrb[18].mxu1 %vm270_vm2, %v1832_v2  ;;  %3859 = vmatpush3.bf16.msra.mxu0 %v4376_v8 }
0x10e2   :  { %3860 = vmatprep.subr.bf16.mxu0 %v4236_v0  ;;  %3610 = vmatprep.mubr.msk.f32.mxu0 %vm4237_vm0, %v4238_v1 }
0x10e3   :  { %3865 = vmatpush3.bf16.msra.mxu1 %v4419_v37  ;;  %3621 = vmatprep.mubr.msk.f32.mxu1 %vm4237_vm0, %v4238_v1 }
0x10e4   :  { %3866 = vmatprep.subr.bf16.mxu1 %v4236_v0 }
0x10e5   :  { %3862 = vmatpush3.bf16.msra.mxu0 %v4386_v12 }
0x10e6   :  { %3869 = vmatprep.subr.bf16.mxu0 %v4236_v0 }
0x10e7   :  { %3868 = vmatpush3.bf16.msra.mxu1 %v4427_v43 }
0x10e8   :  { %3611 = vmatmul.mubr.msk.f32.vlgmr.msra.gmra.mrb[26].mxu0 %vm270_vm2, %v1832_v2  ;;  %3875 = vmatprep.subr.bf16.mxu1 %v4236_v0 }
0x10e9   :  { %3871 = vmatpush3.bf16.msra.mxu0 %v4415_v33  ;;  %3632 = vmatprep.mubr.msk.f32.mxu0 %vm4237_vm0, %v4238_v1 }
0x10ea   :  { %3872 = vmatprep.subr.bf16.mxu0 %v4236_v0 }
0x10ed   :  { %3874 = vmatpush3.bf16.msra.mxu0 %v4434_v46 }
0x10ee   :  { %3881 = vmatprep.subr.bf16.mxu0 %v4236_v0 }
0x11b3   :  { %v1826_v4 = vpop.f32.mrb[24].mxu0 }
0x11b4   :  { %v1901_v5 = vpop.f32.mrb[18].mxu1  ;;  %v3590_v6 = vpop.f32.mrb[25].mxu0 }
0x11b5   :  { %v1902_v7 = vadd.f32 %v1901_v5, %v1826_v4  ;;  %v3601_v10 = vpop.f32.mrb[19].mxu1 }
0x11b7   :  { %v1905_v11 = vadd.f32 %v4491_v3, %v1902_v7 }
0x11b9   :  { %4038 = vtanh.f32 %v1905_v11  ;;  %v3195_v19 = vmul.f32 -1.442695, %v1905_v11 }
0x11bb   :  { %v2003_v15 = vpop.f32.mrb[26].mxu0 }
0x11bc   :  { %v2007_v16 = vadd.f32 %v2003_v15, %v238_v54  ;;  %v3612_v14 = vpop.f32.mrb[27].mxu0 }
0x11be   :  { %4040 = vtanh.f32 %v2007_v16  ;;  %v3197_v21 = vmul.f32 -1.442695, %v2007_v16 }
0x11bf   :  { %4042 = vpow2.f32 %v3195_v19 }
0x11c0   :  { %4044 = vpow2.f32 %v3197_v21 }
0x11c3   :  { %v4039_v17 = vpop.eup %4038 }
0x11c4   :  { %1915 = vrot.lane.b32.xlu0 %v4039_v17, %s4239_s0 }
0x11c8   :  { %v4041_v18 = vpop.eup %4040 }
0x11c9   :  { %2017 = vrot.lane.b32.xlu1 %v4041_v18, %s4239_s0  ;;  %v4043_v22 = vpop.eup %4042 }
0x11ca   :  { %v1909_v23 = vadd.f32 1.0, %v4043_v22  ;;  %v4045_v24 = vpop.eup %4044 }
0x11cb   :  { %v2011_v25 = vadd.f32 1.0, %v4045_v24 }
0x11cc   :  { %4046 = vrcp.f32 %v1909_v23 }
0x11cd   :  { %4048 = vrcp.f32 %v2011_v25 }
0x11d6   :  { %v4047_v13 = vpop.eup %4046 }
0x11d7   :  { %v4049_v27 = vpop.eup %4048  ;;  %v1913_v31 = vmul.f32 %v4047_v13, %v4671_v48 }
0x11d8   :  { %v2015_v35 = vmul.f32 %v4049_v27, %v4673_v49 }
0x1236   :  { %v1916_v58 = vpop.permute.xlu0 %1915 }
0x1237   :  { %v1918_v26 = vmul.f32 %v4047_v13, %v1916_v58 }
0x1239   :  { %1920 = vrot.lane.b32.xlu0 %v1918_v26, %s4240_s20 }
0x123b   :  { %v2018_v30 = vpop.permute.xlu1 %2017 }
0x123c   :  { %v2020_v32 = vmul.f32 %v4049_v27, %v2018_v30 }
0x123e   :  { %2022 = vrot.lane.b32.xlu1 %v2020_v32, %s4240_s20 }
0x12ab   :  { %v1921_v34 = vpop.permute.xlu0 %1920 }
0x12ac   :  { %v4713_v55 = vadd.f32 %v1921_v34, %v1913_v31 }
0x12ae   :  { %4050 = vtanh.f32 %v4713_v55 }
0x12b0   :  { %v2023_v36 = vpop.permute.xlu1 %2022 }
0x12b1   :  { %v4717_v38 = vadd.f32 %v2023_v36, %v2015_v35 }
0x12b3   :  { %4052 = vtanh.f32 %v4717_v38 }
0x12b8   :  { %v4051_v39 = vpop.eup %4050 }
0x12b9   :  { %1926 = vrot.lane.b32.xlu0 %v4051_v39, %s4239_s0 }
0x12bd   :  { %v4053_v40 = vpop.eup %4052 }
0x12be   :  { %2028 = vrot.lane.b32.xlu1 %v4053_v40, %s4239_s0 }
0x132b   :  { %v1927_v29 = vpop.permute.xlu0 %1926 }
0x132c   :  { %v4722_v42 = vmul.f32 %v4047_v13, %v1927_v29 }
0x132e   :  { %2033 = vrot.lane.b32.xlu0 %v4722_v42, %s4240_s20 }
0x1330   :  { %v2029_v44 = vpop.permute.xlu1 %2028 }
0x1331   :  { %v2031_v45 = vmul.f32 %v4049_v27, %v2029_v44 }
0x1333   :  { %2108 = vrot.lane.b32.xlu1 %v2031_v45, %s4240_s20 }
0x13a0   :  { %v2034_v47 = vpop.permute.xlu0 %2033 }
0x13a1   :  { %3622 = vmatmul.mubr.msk.f32.vlgmr.msra.gmra.mrb[20].mxu1 %vm270_vm2, %v2034_v47  ;;  %v248_v47 = vadd.f32 %v4751_v52, %v4470_v62 }
0x13a2   :  { %3877 = vmatpush3.bf16.msra.mxu1 %v4376_v8  ;;  %3643 = vmatprep.mubr.msk.f32.mxu1 %vm4237_vm0, %v4238_v1 }
0x13a3   :  { %3878 = vmatprep.subr.bf16.mxu1 %v4236_v0 }
0x13a5   :  { %v2109_v56 = vpop.permute.xlu1 %2108 }
0x13a6   :  { %3880 = vmatpush3.bf16.msra.mxu1 %v4386_v12  ;;  %3633 = vmatmul.mubr.msk.f32.vlgmr.msra.gmra.mrb[28].mxu0 %vm270_vm2, %v2109_v56 }
0x13a7   :  { %3883 = vmatpush3.bf16.msra.mxu0 %v4419_v37  ;;  %3887 = vmatprep.subr.bf16.mxu1 %v4236_v0 }
0x13a8   :  { %3884 = vmatprep.subr.bf16.mxu0 %v4236_v0  ;;  %3654 = vmatprep.mubr.msk.f32.mxu0 %vm4237_vm0, %v4238_v1 }
0x13a9   :  { %3644 = vmatmul.mubr.msk.f32.vlgmr.msra.gmra.mrb[22].mxu1 %vm270_vm2, %v2109_v56 }
0x13aa   :  { %3889 = vmatpush3.bf16.msra.mxu1 %v4415_v33  ;;  %3665 = vmatprep.mubr.msk.f32.mxu1 %vm4237_vm0, %v4238_v1 }
0x13ab   :  { %3886 = vmatpush3.bf16.msra.mxu0 %v4427_v43  ;;  %3890 = vmatprep.subr.bf16.mxu1 %v4236_v0 }
0x13ac   :  { %3893 = vmatprep.subr.bf16.mxu0 %v4236_v0 }
0x13ae   :  { %3892 = vmatpush3.bf16.msra.mxu1 %v4434_v46 }
0x13af   :  { %3899 = vmatprep.subr.bf16.mxu1 %v4236_v0 }
0x1474   :  { %v2103_v48 = vpop.f32.mrb[20].mxu1 }
0x1475   :  { %v3623_v49 = vpop.f32.mrb[21].mxu1 }
0x1479   :  { %v2178_v50 = vpop.f32.mrb[28].mxu0 }
0x147a   :  { %v2179_v51 = vadd.f32 %v2178_v50, %v2103_v48  ;;  %v3634_v53 = vpop.f32.mrb[29].mxu0 }
0x147c   :  { %v2182_v63 = vadd.f32 %v4491_v3, %v2179_v51  ;;  %v2280_v2 = vpop.f32.mrb[22].mxu1 }
0x147d   :  { %v2284_v4 = vadd.f32 %v2280_v2, %v243_v60  ;;  %v3645_v5 = vpop.f32.mrb[23].mxu1 }
0x147e   :  { %4054 = vtanh.f32 %v2182_v63  ;;  %v3200_v10 = vmul.f32 -1.442695, %v2182_v63 }
0x147f   :  { %4056 = vtanh.f32 %v2284_v4  ;;  %v3202_v11 = vmul.f32 -1.442695, %v2284_v4 }
0x1480   :  { %4058 = vpow2.f32 %v3200_v10 }
0x1481   :  { %4060 = vpow2.f32 %v3202_v11 }
0x1488   :  { %v4055_v6 = vpop.eup %4054 }
0x1489   :  { %v4057_v7 = vpop.eup %4056  ;;  %2192 = vrot.lane.b32.xlu0 %v4055_v6, %s4239_s0 }
0x148a   :  { %2294 = vrot.lane.b32.xlu1 %v4057_v7, %s4239_s0  ;;  %v4059_v54 = vpop.eup %4058 }
0x148b   :  { %v4061_v15 = vpop.eup %4060  ;;  %v2186_v57 = vadd.f32 1.0, %v4059_v54 }
0x148c   :  { %v2288_v16 = vadd.f32 1.0, %v4061_v15 }
0x148d   :  { %4062 = vrcp.f32 %v2186_v57 }
0x148e   :  { %4064 = vrcp.f32 %v2288_v16 }
0x1497   :  { %v4063_v14 = vpop.eup %4062 }
0x1498   :  { %v4065_v18 = vpop.eup %4064  ;;  %v2190_v23 = vmul.f32 %v4063_v14, %v4713_v55 }
0x1499   :  { %v2292_v24 = vmul.f32 %v4065_v18, %v4717_v38 }
0x14fb   :  { %v2193_v17 = vpop.permute.xlu0 %2192 }
0x14fc   :  { %v2295_v19 = vpop.permute.xlu1 %2294  ;;  %v2195_v21 = vmul.f32 %v4063_v14, %v2193_v17 }
0x14fd   :  { %v2297_v22 = vmul.f32 %v4065_v18, %v2295_v19 }
0x14fe   :  { %2197 = vrot.lane.b32.xlu0 %v2195_v21, %s4240_s20 }
0x14ff   :  { %2299 = vrot.lane.b32.xlu1 %v2297_v22, %s4240_s20 }
0x1570   :  { %v2198_v25 = vpop.permute.xlu0 %2197 }
0x1571   :  { %v2300_v13 = vpop.permute.xlu1 %2299  ;;  %v4762_v58 = vadd.f32 %v2198_v25, %v2190_v23 }
0x1572   :  { %v4764_v26 = vadd.f32 %v2300_v13, %v2292_v24 }
0x1573   :  { %4066 = vtanh.f32 %v4762_v58 }
0x1574   :  { %4068 = vtanh.f32 %v4764_v26 }
0x157d   :  { %v4067_v27 = vpop.eup %4066 }
0x157e   :  { %v4069_v30 = vpop.eup %4068  ;;  %2203 = vrot.lane.b32.xlu0 %v4067_v27, %s4239_s0  ;;  %v253_v27 = vadd.f32 %v4751_v52, %v4468_v61 }
0x157f   :  { %2305 = vrot.lane.b32.xlu1 %v4069_v30, %s4239_s0 }
0x15f0   :  { %v2204_v32 = vpop.permute.xlu0 %2203 }
0x15f1   :  { %v2306_v31 = vpop.permute.xlu1 %2305  ;;  %v4770_v34 = vmul.f32 %v4063_v14, %v2204_v32 }
0x15f2   :  { %v2308_v55 = vmul.f32 %v4065_v18, %v2306_v31 }
0x15f3   :  { %2310 = vrot.lane.b32.xlu0 %v4770_v34, %s4240_s20 }
0x15f4   :  { %2385 = vrot.lane.b32.xlu1 %v2308_v55, %s4240_s20 }
0x1665   :  { %v2311_v35 = vpop.permute.xlu0 %2310 }
0x1666   :  { %v2386_v36 = vpop.permute.xlu1 %2385  ;;  %3655 = vmatmul.mubr.msk.f32.vlgmr.msra.gmra.mrb[30].mxu0 %vm270_vm2, %v2311_v35 }
0x1667   :  { %3666 = vmatmul.mubr.msk.f32.vlgmr.msra.gmra.mrb[24].mxu1 %vm270_vm2, %v2386_v36  ;;  %3895 = vmatpush3.bf16.msra.mxu0 %v4376_v8 }
0x1668   :  { %3896 = vmatprep.subr.bf16.mxu0 %v4236_v0  ;;  %3676 = vmatprep.mubr.msk.f32.mxu0 %vm4237_vm0, %v4238_v1 }
0x1669   :  { %3901 = vmatpush3.bf16.msra.mxu1 %v4419_v37  ;;  %3687 = vmatprep.mubr.msk.f32.mxu1 %vm4237_vm0, %v4238_v1 }
0x166a   :  { %3902 = vmatprep.subr.bf16.mxu1 %v4236_v0 }
0x166b   :  { %3898 = vmatpush3.bf16.msra.mxu0 %v4386_v12 }
0x166c   :  { %3905 = vmatprep.subr.bf16.mxu0 %v4236_v0 }
0x166d   :  { %3904 = vmatpush3.bf16.msra.mxu1 %v4427_v43 }
0x166e   :  { %3677 = vmatmul.mubr.msk.f32.vlgmr.msra.gmra.mrb[32].mxu0 %vm270_vm2, %v2386_v36  ;;  %3911 = vmatprep.subr.bf16.mxu1 %v4236_v0 }
0x166f   :  { %3907 = vmatpush3.bf16.msra.mxu0 %v4415_v33  ;;  %3698 = vmatprep.mubr.msk.f32.mxu0 %vm4237_vm0, %v4238_v1 }
0x1670   :  { %3908 = vmatprep.subr.bf16.mxu0 %v4236_v0 }
0x1673   :  { %3910 = vmatpush3.bf16.msra.mxu0 %v4434_v46 }
0x1674   :  { %3917 = vmatprep.subr.bf16.mxu0 %v4236_v0 }
0x1739   :  { %v2380_v38 = vpop.f32.mrb[30].mxu0 }
0x173a   :  { %v2455_v39 = vpop.f32.mrb[24].mxu1  ;;  %v3656_v40 = vpop.f32.mrb[31].mxu0 }
0x173b   :  { %v2456_v29 = vadd.f32 %v2455_v39, %v2380_v38  ;;  %v3667_v44 = vpop.f32.mrb[25].mxu1 }
0x173d   :  { %v2459_v45 = vadd.f32 %v4491_v3, %v2456_v29 }
0x173f   :  { %4070 = vtanh.f32 %v2459_v45  ;;  %v3205_v53 = vmul.f32 -1.442695, %v2459_v45 }
0x1741   :  { %v2557_v56 = vpop.f32.mrb[32].mxu0 }
0x1742   :  { %v2561_v48 = vadd.f32 %v2557_v56, %v248_v47  ;;  %v3678_v49 = vpop.f32.mrb[33].mxu0 }
0x1744   :  { %4072 = vtanh.f32 %v2561_v48  ;;  %v3207_v60 = vmul.f32 -1.442695, %v2561_v48 }
0x1745   :  { %4074 = vpow2.f32 %v3205_v53 }
0x1746   :  { %4076 = vpow2.f32 %v3207_v60 }
0x1749   :  { %v4071_v50 = vpop.eup %4070 }
0x174a   :  { %2469 = vrot.lane.b32.xlu0 %v4071_v50, %s4239_s0 }
0x174e   :  { %v4073_v51 = vpop.eup %4072 }
0x174f   :  { %2571 = vrot.lane.b32.xlu1 %v4073_v51, %s4239_s0  ;;  %v4075_v63 = vpop.eup %4074 }
0x1750   :  { %v2463_v3 = vadd.f32 1.0, %v4075_v63  ;;  %v4077_v2 = vpop.eup %4076 }
0x1751   :  { %v2565_v4 = vadd.f32 1.0, %v4077_v2 }
0x1752   :  { %4078 = vrcp.f32 %v2463_v3 }
0x1753   :  { %4080 = vrcp.f32 %v2565_v4 }
0x175c   :  { %v4079_v62 = vpop.eup %4078 }
0x175d   :  { %v4081_v7 = vpop.eup %4080  ;;  %v2467_v54 = vmul.f32 %v4079_v62, %v4762_v58 }
0x175e   :  { %v2569_v16 = vmul.f32 %v4081_v7, %v4764_v26 }
0x17bc   :  { %v2470_v5 = vpop.permute.xlu0 %2469 }
0x17bd   :  { %v2472_v6 = vmul.f32 %v4079_v62, %v2470_v5 }
0x17bf   :  { %2474 = vrot.lane.b32.xlu0 %v2472_v6, %s4240_s20 }
0x17c1   :  { %v2572_v10 = vpop.permute.xlu1 %2571 }
0x17c2   :  { %v2574_v11 = vmul.f32 %v4081_v7, %v2572_v10  ;;  %v4241_v10 = vmov 0  }
0x17c3   :  { %3948 = vset.pattern.permute.xlu0 %v4241_v10  ;;  %3949 = vset.pattern.permute.xlu1 %v4241_v10 }
0x17c4   :  { %2576 = vrot.lane.b32.xlu1 %v2574_v11, %s4240_s20 }
0x1831   :  { %v2475_v15 = vpop.permute.xlu0 %2474 }
0x1832   :  { %v4804_v57 = vadd.f32 %v2475_v15, %v2467_v54 }
0x1834   :  { %4082 = vtanh.f32 %v4804_v57 }
0x1836   :  { %v2577_v14 = vpop.permute.xlu1 %2576 }
0x1837   :  { %v4808_v17 = vadd.f32 %v2577_v14, %v2569_v16 }
0x1839   :  { %4084 = vtanh.f32 %v4808_v17 }
0x183e   :  { %v4083_v18 = vpop.eup %4082 }
0x183f   :  { %2480 = vrot.lane.b32.xlu0 %v4083_v18, %s4239_s0 }
0x1843   :  { %v4085_v19 = vpop.eup %4084 }
0x1844   :  { %2582 = vrot.lane.b32.xlu1 %v4085_v19, %s4239_s0 }
0x18b1   :  { %v2481_v21 = vpop.permute.xlu0 %2480 }
0x18b2   :  { %v4813_v22 = vmul.f32 %v4079_v62, %v2481_v21 }
0x18b4   :  { %2587 = vrot.lane.b32.xlu0 %v4813_v22, %s4240_s20 }
0x18b6   :  { %v2583_v23 = vpop.permute.xlu1 %2582 }
0x18b7   :  { %v2585_v24 = vmul.f32 %v4081_v7, %v2583_v23 }
0x18b9   :  { %2662 = vrot.lane.b32.xlu1 %v2585_v24, %s4240_s20 }
0x1926   :  { %v2588_v25 = vpop.permute.xlu0 %2587 }
0x1927   :  { %3688 = vmatmul.mubr.msk.f32.vlgmr.msra.gmra.mrb[26].mxu1 %vm270_vm2, %v2588_v25 }
0x1928   :  { %3913 = vmatpush3.bf16.msra.mxu1 %v4376_v8  ;;  %3709 = vmatprep.mubr.msk.f32.mxu1 %vm4237_vm0, %v4238_v1 }
0x1929   :  { %3914 = vmatprep.subr.bf16.mxu1 %v4236_v0 }
0x192b   :  { %v2663_v13 = vpop.permute.xlu1 %2662 }
0x192c   :  { %3916 = vmatpush3.bf16.msra.mxu1 %v4386_v12  ;;  %3699 = vmatmul.mubr.msk.f32.vlgmr.msra.gmra.mrb[34].mxu0 %vm270_vm2, %v2663_v13 }
0x192d   :  { %3923 = vmatprep.subr.bf16.mxu1 %v4236_v0  ;;  %3919 = vmatpush3.bf16.msra.mxu0 %v4419_v37 }
0x192e   :  { %3920 = vmatprep.subr.bf16.mxu0 %v4236_v0  ;;  %3720 = vmatprep.mubr.msk.f32.mxu0 %vm4237_vm0, %v4238_v1 }
0x192f   :  { %3710 = vmatmul.mubr.msk.f32.vlgmr.msra.gmra.mrb[28].mxu1 %vm270_vm2, %v2663_v13 }
0x1930   :  { %3925 = vmatpush3.bf16.msra.mxu1 %v4415_v33  ;;  %3731 = vmatprep.mubr.msk.f32.mxu1 %vm4237_vm0, %v4238_v1  ;;  %v4111_v33 = vld [vmem:[%s4922_s7] ss:$0 sm:$0xff] }
0x1931   :  { %3926 = vmatprep.subr.bf16.mxu1 %v4236_v0  ;;  %3922 = vmatpush3.bf16.msra.mxu0 %v4427_v43 }
0x1932   :  { %3929 = vmatprep.subr.bf16.mxu0 %v4236_v0 }
0x1934   :  { %3928 = vmatpush3.bf16.msra.mxu1 %v4434_v46 }
0x19fa   :  { %v2657_v8 = vpop.f32.mrb[26].mxu1 }
0x19fb   :  { %v3689_v12 = vpop.f32.mrb[27].mxu1 }
0x19ff   :  { %v2732_v37 = vpop.f32.mrb[34].mxu0 }
0x1a00   :  { %v2733_v58 = vadd.f32 %v2732_v37, %v2657_v8  ;;  %v3700_v26 = vpop.f32.mrb[35].mxu0 }
0x1a02   :  { %v2736_v30 = vadd.f32 %v4111_v33, %v2733_v58  ;;  %v2834_v32 = vpop.f32.mrb[28].mxu1 }
0x1a03   :  { %v2838_v31 = vadd.f32 %v2834_v32, %v253_v27  ;;  %v3711_v43 = vpop.f32.mrb[29].mxu1 }
0x1a04   :  { %4086 = vtanh.f32 %v2736_v30  ;;  %v3210_v35 = vmul.f32 -1.442695, %v2736_v30 }
0x1a05   :  { %4088 = vtanh.f32 %v2838_v31  ;;  %v3212_v36 = vmul.f32 -1.442695, %v2838_v31 }
0x1a06   :  { %4090 = vpow2.f32 %v3210_v35  ;;  %v3051_v35 = vld [vmem:[%s4923_s8 + $0x8] sm:$0xff] }
0x1a07   :  { %4092 = vpow2.f32 %v3212_v36  ;;  %v3052_v36 = vld [vmem:[%s4923_s8 + $0x10] sm:$0xff] }
0x1a0e   :  { %v4087_v55 = vpop.eup %4086 }
0x1a0f   :  { %v4089_v46 = vpop.eup %4088  ;;  %2746 = vrot.lane.b32.xlu0 %v4087_v55, %s4239_s0 }
0x1a10   :  { %2848 = vrot.lane.b32.xlu1 %v4089_v46, %s4239_s0  ;;  %v4091_v61 = vpop.eup %4090  ;;  %v3050_v46 = vld [vmem:[%s4923_s8] sm:$0xff] }
0x1a11   :  { %v4093_v52 = vpop.eup %4092  ;;  %v2740_v38 = vadd.f32 1.0, %v4091_v61  ;;  %v3930_v61 = vpack.c.bf16 %v3051_v35, %v3050_v46 }
0x1a12   :  { %v2842_v39 = vadd.f32 1.0, %v4093_v52  ;;  %v3053_v52 = vld [vmem:[%s4923_s8 + $0x18] sm:$0xff]  ;;  %s4242_s8 = smov [#allocation10]  }
0x1a13   :  { %4094 = vrcp.f32 %v2740_v38  ;;  %v3933_v38 = vpack.c.bf16 %v3053_v52, %v3052_v36  ;;  %s3141_s3 = sshll.u32 %s4242_s8, 4  ;;  %s3142_s3 = int_to_ptr.vmem [resolvable:$true] %s3141_s3 }
0x1a14   :  { %4096 = vrcp.f32 %v2842_v39  ;;  %s4200_s17 = scalar_lea.vmem %s3142_s3, 128  ;;  %p4205_p5 = scmp.lt.s32.totalorder %s3142_s3, %s3142_s3 }
0x1a15   :  { %p4201_p4 = scmp.ne.s32.totalorder %s3142_s3, %s4200_s17  ;;  %p4206_p6 = scmp.lt.s32.totalorder %s4200_s17, %s4200_s17 }
0x1a17   :  { %p4207_p7 = por %p4206_p6, %p4205_p5 }
0x1a19   :  { %p4208_p8 = pnand %p4207_p7, %p4201_p4 }
0x1a1d   :  { %v4095_v40 = vpop.eup %4094 }
0x1a1e   :  { %v4097_v44 = vpop.eup %4096  ;;  %v2744_v48 = vmul.f32 %v4095_v40, %v4804_v57 }
0x1a1f   :  { %v2846_v49 = vmul.f32 %v4097_v44, %v4808_v17  ;;  %v256_v17 = vld [vmem:[%s4916_s1] sm:$0xff] }
0x1a20   :  { %vm545_vm3 = vcmp.eq.s32.totalorder %v256_v17, 1  ;;  %vm1376_vm4 = vcmp.eq.s32.totalorder %v256_v17, 4  ;;  %vm1930_vm5 = vcmp.eq.s32.totalorder %v256_v17, 6  ;;  %vm2484_vm6 = vcmp.eq.s32.totalorder %v256_v17, 8 }
0x1a21   :  { %v546_v19 = vsel %vm545_vm3, 1, %v4241_v10  ;;  %v1931_v21 = vsel %vm1930_vm5, 1, %v4241_v10  ;;  %v2485_v23 = vsel %vm2484_vm6, 1, %v4241_v10  ;;  %vm3038_vm7 = vcmp.eq.s32.totalorder %v256_v17, 10 }
0x1a22   :  { %v3039_v24 = vsel %vm3038_vm7, 1, %v4241_v10  ;;  %vm822_vm8 = vcmp.eq.s32.totalorder %v256_v17, 2  ;;  %vm1099_vm9 = vcmp.eq.s32.totalorder %v256_v17, 3  ;;  %vm1653_vm10 = vcmp.eq.s32.totalorder %v256_v17, 5 }
0x1a23   :  { %v823_v26 = vsel %vm822_vm8, 1, %v4241_v10  ;;  %v1100_v27 = vsel %vm1099_vm9, 1, %v4241_v10  ;;  %vm2207_vm11 = vcmp.eq.s32.totalorder %v256_v17, 7  ;;  %vm2761_vm12 = vcmp.eq.s32.totalorder %v256_v17, 9 }
0x1a24   :  { %v2208_v30 = vsel %vm2207_vm11, 1, %v4241_v10  ;;  %v2762_v32 = vsel %vm2761_vm12, 1, %v4241_v10 }
0x1a81   :  { %v2747_v29 = vpop.permute.xlu0 %2746 }
0x1a82   :  { %v2849_v45 = vpop.permute.xlu1 %2848  ;;  %v2749_v47 = vmul.f32 %v4095_v40, %v2747_v29 }
0x1a83   :  { %v2851_v56 = vmul.f32 %v4097_v44, %v2849_v45 }
0x1a84   :  { %2751 = vrot.lane.b32.xlu0 %v2749_v47, %s4240_s20 }
0x1a85   :  { %2853 = vrot.lane.b32.xlu1 %v2851_v56, %s4240_s20 }
0x1af6   :  { %v2752_v50 = vpop.permute.xlu0 %2751 }
0x1af7   :  { %v2854_v51 = vpop.permute.xlu1 %2853  ;;  %v4849_v53 = vadd.f32 %v2752_v50, %v2744_v48 }
0x1af8   :  { %v2856_v60 = vadd.f32 %v2854_v51, %v2846_v49 }
0x1af9   :  { %4098 = vtanh.f32 %v4849_v53 }
0x1afa   :  { %4100 = vtanh.f32 %v2856_v60 }
0x1b03   :  { %v4099_v63 = vpop.eup %4098 }
0x1b04   :  { %v4101_v3 = vpop.eup %4100  ;;  %2757 = vrot.lane.b32.xlu0 %v4099_v63, %s4239_s0 }
0x1b05   :  { %2859 = vrot.lane.b32.xlu1 %v4101_v3, %s4239_s0 }
0x1b76   :  { %v2758_v2 = vpop.permute.xlu0 %2757 }
0x1b77   :  { %v2860_v4 = vpop.permute.xlu1 %2859  ;;  %v4854_v62 = vmul.f32 %v4095_v40, %v2758_v2 }
0x1b78   :  { %v2862_v5 = vmul.f32 %v4097_v44, %v2860_v4 }
0x1b79   :  { %2864 = vrot.lane.b32.xlu0 %v4854_v62, %s4240_s20 }
0x1b7a   :  { %2939 = vrot.lane.b32.xlu1 %v2862_v5, %s4240_s20 }
0x1beb   :  { %v2865_v6 = vpop.permute.xlu0 %2864 }
0x1bec   :  { %v2940_v7 = vpop.permute.xlu1 %2939  ;;  %3721 = vmatmul.mubr.msk.f32.vlgmr.msra.gmra.mrb[36].mxu0 %vm270_vm2, %v2865_v6 }
0x1bed   :  { %3732 = vmatmul.mubr.msk.f32.vlgmr.msra.gmra.mrb[30].mxu1 %vm270_vm2, %v2940_v7  ;;  %3742 = vmatprep.mubr.msk.f32.mxu0 %vm4237_vm0, %v4238_v1  ;;  %v1377_v1 = vsel %vm1376_vm4, 1, %v4241_v10 }
0x1bee   :  { %3931 = vmatpush3.bf16.msra.mxu0 %v3930_v61 }
0x1bef   :  { %3932 = vmatprep.subr.bf16.mxu0 %v4236_v0 }
0x1bf2   :  { %3934 = vmatpush3.bf16.msra.mxu0 %v3933_v38 }
0x1cbf   :  { %v2934_v11 = vpop.f32.mrb[36].mxu0 }
0x1cc0   :  { %v3009_v54 = vpop.f32.mrb[30].mxu1  ;;  %v3722_v15 = vpop.f32.mrb[37].mxu0 }
0x1cc1   :  { %v3010_v57 = vadd.f32 %v3009_v54, %v2934_v11  ;;  %v3733_v16 = vpop.f32.mrb[31].mxu1 }
0x1cc3   :  { %v3013_v14 = vadd.f32 %v4111_v33, %v3010_v57  ;;  %v1654_v33 = vsel %vm1653_vm10, 1, %v4241_v10 }
0x1cc5   :  { %4102 = vtanh.f32 %v3013_v14  ;;  %v3215_v25 = vmul.f32 -1.442695, %v3013_v14 }
0x1cc7   :  { %4104 = vpow2.f32 %v3215_v25 }
0x1ccf   :  { %v4103_v18 = vpop.eup %4102 }
0x1cd0   :  { %3023 = vrot.lane.b32.xlu0 %v4103_v18, %s4239_s0 }
0x1cd1   :  { %v4105_v13 = vpop.eup %4104 }
0x1cd2   :  { %v3017_v8 = vadd.f32 1.0, %v4105_v13 }
0x1cd4   :  { %548 = vperm.xlu0 %3948, %v546_v19   ;;  %4106 = vrcp.f32 %v3017_v8 }
0x1cd8   :  { %1379 = vperm.xlu0 %3948, %v1377_v1  }
0x1cdc   :  { %1933 = vperm.xlu0 %3948, %v1931_v21  }
0x1cde   :  { %v4867_v12 = vpop.eup %4106 }
0x1cdf   :  { %v3021_v31 = vmul.f32 %v4867_v12, %v4849_v53 }
0x1ce0   :  { %2487 = vperm.xlu0 %3948, %v2485_v23  }
0x1ce4   :  { %3041 = vperm.xlu0 %3948, %v3039_v24  }
0x1d42   :  { %v3024_v37 = vpop.permute.xlu0 %3023 }
0x1d43   :  { %v3026_v58 = vmul.f32 %v4867_v12, %v3024_v37 }
0x1d45   :  { %3028 = vrot.lane.b32.xlu1 %v3026_v58, %s4240_s20 }
0x1d49   :  { %825 = vperm.xlu1 %3949, %v823_v26  }
0x1d4d   :  { %1102 = vperm.xlu1 %3949, %v1100_v27  }
0x1d51   :  { %1656 = vperm.xlu1 %3949, %v1654_v33  }
0x1d53   :  { %v549_v44 = vpop.permute.xlu0 %548 }
0x1d54   :  { %vm550_vm13 = vcmp.eq.s32.totalorder %v549_v44, 1 }
0x1d55   :  { %2210 = vperm.xlu1 %3949, %v2208_v30   ;;  %v551_v56 = vsel %vm550_vm13, %v4507_v41, 0.0 }
0x1d57   :  { %v1380_v45 = vpop.permute.xlu0 %1379 }
0x1d58   :  { %vm1381_vm0 = vcmp.eq.s32.totalorder %v1380_v45, 1 }
0x1d59   :  { %2764 = vperm.xlu1 %3949, %v2762_v32  }
0x1d5b   :  { %v1934_v49 = vpop.permute.xlu0 %1933 }
0x1d5c   :  { %vm1935_vm3 = vcmp.eq.s32.totalorder %v1934_v49, 1 }
0x1d5f   :  { %v2488_v60 = vpop.permute.xlu0 %2487 }
0x1d60   :  { %vm2489_vm5 = vcmp.eq.s32.totalorder %v2488_v60, 1 }
0x1db7   :  { %v3029_v43 = vpop.permute.xlu1 %3028 }
0x1db8   :  { %v3031_v55 = vadd.f32 %v3029_v43, %v3021_v31 }
0x1dba   :  { %4108 = vtanh.f32 %v3031_v55 }
0x1dc4   :  { %v4109_v39 = vpop.eup %4108 }
0x1dc5   :  { %3034 = vrot.lane.b32.xlu1 %v4109_v39, %s4239_s0 }
0x1dc8   :  { %v826_v40 = vpop.permute.xlu1 %825 }
0x1dc9   :  { %vm827_vm14 = vcmp.eq.s32.totalorder %v826_v40, 1 }
0x1dca   :  { %v828_v48 = vsel %vm827_vm14, %v4550_v28, %v551_v56  ;;  %v3042_v28 = vpop.permute.xlu0 %3041 }
0x1dcb   :  { %vm3043_vm7 = vcmp.eq.s32.totalorder %v3042_v28, 1 }
0x1dcc   :  { %v1103_v29 = vpop.permute.xlu1 %1102 }
0x1dcd   :  { %vm1104_vm15 = vcmp.eq.s32.totalorder %v1103_v29, 1 }
0x1dce   :  { %v1105_v50 = vsel %vm1104_vm15, %v4593_v20, %v828_v48 }
0x1dcf   :  { %v1382_v51 = vsel %vm1381_vm0, %v4636_v9, %v1105_v50 }
0x1dd0   :  { %v1657_v47 = vpop.permute.xlu1 %1656 }
0x1dd1   :  { %vm1658_vm1 = vcmp.eq.s32.totalorder %v1657_v47, 1 }
0x1dd2   :  { %v1659_v53 = vsel %vm1658_vm1, %v4679_v59, %v1382_v51 }
0x1dd3   :  { %v1936_v3 = vsel %vm1935_vm3, %v4722_v42, %v1659_v53 }
0x1dd4   :  { %v2211_v0 = vpop.permute.xlu1 %2210 }
0x1dd5   :  { %vm2212_vm4 = vcmp.eq.s32.totalorder %v2211_v0, 1 }
0x1dd6   :  { %v2213_v41 = vsel %vm2212_vm4, %v4770_v34, %v1936_v3 }
0x1dd7   :  { %v2490_v20 = vsel %vm2489_vm5, %v4813_v22, %v2213_v41 }
0x1dd8   :  { %v2765_v63 = vpop.permute.xlu1 %2764 }
0x1dd9   :  { %vm2766_vm6 = vcmp.eq.s32.totalorder %v2765_v63, 1 }
0x1dda   :  { %v2767_v9 = vsel %vm2766_vm6, %v4854_v62, %v2490_v20 }
0x1e37   :  { %v3035_v2 = vpop.permute.xlu1 %3034 }
0x1e38   :  { %v3037_v4 = vmul.f32 %v4867_v12, %v3035_v2 }
0x1e3a   :  { %v3044_v59 = vsel %vm3043_vm7, %v3037_v4, %v2767_v9 }
0x1e3b   :  { %3046 = vrot.lane.b32.xlu0 %v3044_v59, %s4240_s20 }
0x1ead   :  { %v3047_v5 = vpop.permute.xlu0 %3046 }
0x1eae   :  { %3049 = vst.msk [vmem:[#allocation10] sm:$0xff] %vm270_vm2, %v3047_v5  ;;  %3743 = vmatmul.mubr.msk.f32.vlgmr.msra.gmra.mrb[38].mxu0 %vm270_vm2, %v3047_v5 }
0x1eaf   :  { %4211 = shalt.err (!%p4208_p8)
}
0x1eb0   :  { %s4212_s21 = scalar_lea.hbm %s4925_s10, 128 }
0x1eb1   :  { %p4213_p9 = scmp.ne.s32.totalorder %s4925_s10, %s4212_s21  ;;  %p4216_p10 = scmp.lt.u32.totalorder %s4212_s21, %s4925_s10 }
0x1eb3   :  { %p4218_p11 = pnand %p4216_p10, %p4213_p9 }
0x1eb5   :  { %4221 = shalt.err (!%p4218_p11)
}
0x1eb6   :  { %3144 = dma.vmem_to_hbm [thread:$0]  %s3142_s3, 128, %s4925_s10, [#allocation4]   ;;  %v3216_v42 = vld [vmem:[#allocation8] ss:$0 sm:$0xff]  ;;  %vm3133_vm2 = vcmask 15360  }
0x1f81   :  { %v3129_v34 = vpop.f32.mrb[38].mxu0 }
0x1f82   :  { %v3130_v22 = vadd.f32 %v3216_v42, %v3129_v34  ;;  %v3744_v62 = vpop.f32.mrb[39].mxu0 }
0x1f84   :  { %3134 = vst.msk [vmem:[%s4926_s11] sm:$0xff] %vm3133_vm2, %v3130_v22 }
0x1f85   :  { %4228 = dma.done.wait [#allocation4], 128  }
0x1f86   :  { %4229 = vsyncadd [#allocation4], 4294967168 }
0x1f87   :  { %3152 = vsyncpa [#allocation3], 1 }
0x1f88   :  { %3153 = vsyncpa [#allocation6], 1 }
0x1f89   :  { %3154 = vsyncpa [#allocation9], 1 }
0x1f8a   :  { %3155 = vsyncpa [#allocation4], 1 }

</bundles_post_ra>
